<compile_context>
chip_gen: v5e
topology: v5e:2x2
jax: 0.10.0
libtpu: 0.0.40
codegen_flags: <defaults>
</compile_context>

<pallas_src>
import numpy as np
import jax
import jax.numpy as jnp
from jax.experimental import pallas as pl
from jax.experimental.pallas import tpu as pltpu


HIDDEN = 32
VOCAB = 16          # synthetic atom-type vocabulary
NUM_MP_STEPS = 2    # message-passing layers (cutoff_layers=None -> keep all)

# Documented numerics choice (perf-review note): the sigmoid denominator reciprocal is
# routed to the EUP with approx=True (~1e-4 relative error in activations).  Set False
# for a slightly closer match to the PyTorch reference.
_APPROX_SIGMOID = True


def _round_up(x, m):
    return ((x + m - 1) // m) * m


def _pick_tile(rows, hi=512):
    """Power-of-two row tile in [128, hi]; large tiles amortize grid-step overhead."""
    t = 128
    while t < hi and t < rows:
        t *= 2
    return t


def _bf16(x):
    return x.astype(jnp.bfloat16)


def _silu(x):
    # x * sigmoid(x); reciprocal lands on the EUP slot (free next to MXU/VPU work).
    return x * pl.reciprocal(1.0 + jnp.exp(-x), approx=_APPROX_SIGMOID)


# ----------------------------------------------------------------------------
# Kernel 1: encoder  silu(W^T x + b)  — feature-major, lane-dense output
# ----------------------------------------------------------------------------
def _linear_silu_kernel(x_ref, w_ref, b_ref, o_ref):
    acc = jnp.dot(w_ref[...], _bf16(x_ref[...]),
                  preferred_element_type=jnp.float32) + b_ref[...]
    o_ref[...] = _silu(acc).astype(o_ref.dtype)


def linear_silu(x, w_t, b, tile_m):
    """silu(w_t @ x + b); x:[K,M] (M % tile_m == 0), w_t:[H,K] bf16, b:[H,1] f32."""
    K, M = x.shape
    Hout = w_t.shape[0]
    col = lambda i: (0, i)
    full = lambda i: (0, 0)
    return pl.pallas_call(
        _linear_silu_kernel,
        out_shape=jax.ShapeDtypeStruct((Hout, M), jnp.bfloat16),
        grid=(M // tile_m,),
        in_specs=[
            pl.BlockSpec((K, tile_m), col),
            pl.BlockSpec((Hout, K), full),
            pl.BlockSpec((Hout, 1), full),
        ],
        out_specs=pl.BlockSpec((Hout, tile_m), col),
        compiler_params=pltpu.CompilerParams(dimension_semantics=("parallel",)),
    )(x, w_t, b)


# ----------------------------------------------------------------------------
# Kernel 2: fused edge update (single K=96 matmul over [edge|send|recv])
#   edge_new = edge + ( W2^T silu(W1^T x + b1) + b2 ),  x = [edge; send; recv]
# ----------------------------------------------------------------------------
def _edge_update_kernel(x_ref, w1_ref, b1_ref, w2_ref, b2_ref, o_ref):
    H = o_ref.shape[0]
    x = x_ref[...]                                                  # [3H, tile_e] bf16
    h = jnp.dot(w1_ref[...], x, preferred_element_type=jnp.float32) + b1_ref[...]
    h = _silu(h)
    upd = jnp.dot(w2_ref[...], _bf16(h),
                  preferred_element_type=jnp.float32) + b2_ref[...]
    o_ref[...] = (x[:H, :].astype(jnp.float32) + upd).astype(o_ref.dtype)


def edge_update(x_edge, layer, tile_e):
    C, Ep = x_edge.shape          # C = 3H
    H = C // 3
    col = lambda i: (0, i)
    full = lambda i: (0, 0)
    return pl.pallas_call(
        _edge_update_kernel,
        out_shape=jax.ShapeDtypeStruct((H, Ep), jnp.bfloat16),
        grid=(Ep // tile_e,),
        in_specs=[
            pl.BlockSpec((C, tile_e), col),
            pl.BlockSpec((H, C), full),
            pl.BlockSpec((H, 1), full),
            pl.BlockSpec((H, H), full),
            pl.BlockSpec((H, 1), full),
        ],
        out_specs=pl.BlockSpec((H, tile_e), col),
        compiler_params=pltpu.CompilerParams(dimension_semantics=("parallel",)),
    )(x_edge, layer["We1_T"], layer["be1"], layer["We2_T"], layer["be2"])


# ----------------------------------------------------------------------------
# Kernel 3: fused node update with receiver-sorted edge banding (scalar prefetch)
#   agg      = segment_sum(edge_feat, receivers)   (bf16 one-hot on the MXU,
#                                                   only the edge tiles of this
#                                                   node tile's band are visited)
#   node_new = node + ( W2^T silu(W1n^T node + W1a^T agg + b1) + b2 )
# ----------------------------------------------------------------------------
def _node_update_kernel(bs_ref, bl_ref, recv_ref, edge_ref, node_ref,
                        w1n_ref, w1a_ref, b1_ref, w2_ref, b2_ref,
                        o_ref, agg_ref):
    i = pl.program_id(0)
    j = pl.program_id(1)
    tile_n = o_ref.shape[1]
    tile_e = edge_ref.shape[1]

    @pl.when(j == 0)
    def _():
        agg_ref[...] = jnp.zeros_like(agg_ref)

    @pl.when(j < bl_ref[i])          # skip edge tiles outside this node tile's band
    def _():
        # Padded edges carry a sentinel receiver (-1) and contribute nothing.
        node_ids = i * tile_n + jax.lax.broadcasted_iota(
            jnp.int32, (tile_e, tile_n), 1)
        onehot = (recv_ref[...] == node_ids).astype(jnp.bfloat16)   # exact in bf16
        agg_ref[...] += jnp.dot(edge_ref[...], onehot,
                                preferred_element_type=jnp.float32)

    @pl.when(j == pl.num_programs(1) - 1)
    def _():
        nf = node_ref[...]
        h = (jnp.dot(w1n_ref[...], nf, preferred_element_type=jnp.float32)
             + jnp.dot(w1a_ref[...], _bf16(agg_ref[...]),
                       preferred_element_type=jnp.float32)
             + b1_ref[...])
        h = _silu(h)
        upd = jnp.dot(w2_ref[...], _bf16(h),
                      preferred_element_type=jnp.float32) + b2_ref[...]
        o_ref[...] = (nf.astype(jnp.float32) + upd).astype(o_ref.dtype)


def node_update(band_start, band_len, recv_scatter, edge_feat, node_feat, layer,
                tile_n, tile_e):
    H, Np = node_feat.shape
    _, Ep = edge_feat.shape
    n_i = Np // tile_n
    n_j = Ep // tile_e

    def _band_tile(j, bs, bl, i):
        last = jnp.maximum(bl[i] - 1, 0)
        return jnp.where(bl[i] > 0, bs[i] + jnp.minimum(j, last), 0)

    edge_map = lambda i, j, bs, bl: (0, _band_tile(j, bs, bl, i))
    recv_map = lambda i, j, bs, bl: (_band_tile(j, bs, bl, i), 0)
    node_map = lambda i, j, bs, bl: (0, i)
    full = lambda i, j, bs, bl: (0, 0)

    return pl.pallas_call(
        _node_update_kernel,
        out_shape=jax.ShapeDtypeStruct((H, Np), jnp.bfloat16),
        grid_spec=pltpu.PrefetchScalarGridSpec(
            num_scalar_prefetch=2,
            grid=(n_i, n_j),
            in_specs=[
                pl.BlockSpec((tile_e, 1), recv_map),
                pl.BlockSpec((H, tile_e), edge_map),
                pl.BlockSpec((H, tile_n), node_map),
                pl.BlockSpec((H, H), full),
                pl.BlockSpec((H, H), full),
                pl.BlockSpec((H, 1), full),
                pl.BlockSpec((H, H), full),
                pl.BlockSpec((H, 1), full),
            ],
            out_specs=pl.BlockSpec((H, tile_n), node_map),
            scratch_shapes=[pltpu.VMEM((H, tile_n), jnp.float32)]),
        compiler_params=pltpu.CompilerParams(
            dimension_semantics=("parallel", "arbitrary")),
    )(band_start, band_len, recv_scatter, edge_feat, node_feat,
      layer["Wn1_n_T"], layer["Wn1_a_T"], layer["bn1"], layer["Wn2_T"], layer["bn2"])


# ----------------------------------------------------------------------------
# Kernel 4: fused heads (energy + forces packed, normalizers folded).
#   Pooling is done OUTSIDE the kernel so the node axis is fully 'parallel'
#   (both v7x TensorCores).  Output is lane-dense [4, Np].
# ----------------------------------------------------------------------------
def _heads_kernel(nf_ref, w1_ref, b1_ref, w2_ref, b2_ref, o_ref):
    h = jnp.dot(w1_ref[...], nf_ref[...],
                preferred_element_type=jnp.float32) + b1_ref[...]
    h = _silu(h)
    o_ref[...] = jnp.dot(w2_ref[...], _bf16(h),
                         preferred_element_type=jnp.float32) + b2_ref[...]


def heads_forward(node_feat, hp, tile_n):
    H, Np = node_feat.shape
    col = lambda i: (0, i)
    full = lambda i: (0, 0)
    return pl.pallas_call(
        _heads_kernel,
        out_shape=jax.ShapeDtypeStruct((4, Np), jnp.float32),
        grid=(Np // tile_n,),
        in_specs=[
            pl.BlockSpec((H, tile_n), col),
            pl.BlockSpec((2 * H, H), full),
            pl.BlockSpec((2 * H, 1), full),
            pl.BlockSpec((4, 2 * H), full),
            pl.BlockSpec((4, 1), full),
        ],
        out_specs=pl.BlockSpec((4, tile_n), col),
        compiler_params=pltpu.CompilerParams(dimension_semantics=("parallel",)),
    )(node_feat, hp["W1p_T"], hp["b1p"], hp["W2p_T"], hp["b2p"])


# ----------------------------------------------------------------------------
# Parameters (deterministic synthetic weights; same logical structure as before)
# ----------------------------------------------------------------------------
def _linear_init(key, din, dout):
    kw, kb = jax.random.split(key)
    scale = 1.0 / np.sqrt(din)
    w = jax.random.uniform(kw, (din, dout), jnp.float32, -scale, scale)
    b = jax.random.uniform(kb, (dout,), jnp.float32, -scale, scale)
    return w, b


def init_params(key):
    keys = iter(jax.random.split(key, 32))
    p = {}
    p["W_emb"], p["b_emb"] = _linear_init(next(keys), VOCAB, HIDDEN)
    p["W_edge"], p["b_edge"] = _linear_init(next(keys), 4, HIDDEN)
    p["mp"] = []
    for _ in range(NUM_MP_STEPS):
        layer = {}
        layer["We1"], layer["be1"] = _linear_init(next(keys), 3 * HIDDEN, HIDDEN)
        layer["We2"], layer["be2"] = _linear_init(next(keys), HIDDEN, HIDDEN)
        layer["Wn1"], layer["bn1"] = _linear_init(next(keys), 2 * HIDDEN, HIDDEN)
        layer["Wn2"], layer["bn2"] = _linear_init(next(keys), HIDDEN, HIDDEN)
        p["mp"].append(layer)
    e = {}
    e["W1"], e["b1"] = _linear_init(next(keys), HIDDEN, HIDDEN)
    e["W2"], e["b2"] = _linear_init(next(keys), HIDDEN, 1)
    e["norm_scale"] = jnp.float32(2.0)
    e["norm_shift"] = jnp.float32(-1.0)
    p["energy"] = e
    f = {}
    f["W1"], f["b1"] = _linear_init(next(keys), HIDDEN, HIDDEN)
    f["W2"], f["b2"] = _linear_init(next(keys), HIDDEN, 3)
    f["norm_scale"] = jnp.float32(0.5)
    f["norm_shift"] = jnp.float32(0.0)
    p["forces"] = f
    return p


def prepare_params(p):
    """One-time transpose (feature-major) / pack / bf16 cast of parameters."""
    H = HIDDEN
    col = lambda b: b.reshape(-1, 1).astype(jnp.float32)
    q = {
        "W_emb_T": _bf16(p["W_emb"].T), "b_emb": col(p["b_emb"]),
        "W_edge_T": _bf16(p["W_edge"].T), "b_edge": col(p["b_edge"]),
        "mp": [],
    }
    for layer in p["mp"]:
        q["mp"].append({
            "We1_T": _bf16(layer["We1"].T),          # [H, 3H]  (edge | send | recv)
            "be1": col(layer["be1"]),
            "We2_T": _bf16(layer["We2"].T),
            "be2": col(layer["be2"]),
            "Wn1_n_T": _bf16(layer["Wn1"][:H].T),    # [H, H]
            "Wn1_a_T": _bf16(layer["Wn1"][H:].T),    # [H, H]
            "bn1": col(layer["bn1"]),
            "Wn2_T": _bf16(layer["Wn2"].T),
            "bn2": col(layer["bn2"]),
        })
    e, f = p["energy"], p["forces"]
    # Pack energy (H->1) and forces (H->3) into one 2-layer MLP; fold affine
    # normalizers into the 2nd layer (an affine commutes exactly with mean-pool).
    W1p = jnp.concatenate([e["W1"], f["W1"]], axis=1)                    # [H, 2H]
    b1p = jnp.concatenate([e["b1"], f["b1"]])                            # [2H]
    W2p = jnp.zeros((2 * H, 4), jnp.float32)
    W2p = W2p.at[:H, 0:1].set(e["W2"] * e["norm_scale"])
    W2p = W2p.at[H:, 1:4].set(f["W2"] * f["norm_scale"])
    b2p = jnp.zeros((4,), jnp.float32)
    b2p = b2p.at[0].set(e["b2"][0] * e["norm_scale"] + e["norm_shift"])
    b2p = b2p.at[1:4].set(f["b2"] * f["norm_scale"] + f["norm_shift"])
    q["heads"] = {"W1p_T": _bf16(W1p.T), "b1p": col(b1p),
                  "W2p_T": _bf16(W2p.T), "b2p": col(b2p)}
    return q


# ----------------------------------------------------------------------------
# GraphRegressor.forward
# ----------------------------------------------------------------------------
def graph_regressor_forward(params, atomic_numbers, positions, senders,
                            receivers, n_node):
    """Returns {'node_features', 'energy', 'forces'} like GraphRegressor.forward."""
    N = atomic_numbers.shape[0]
    E = senders.shape[0]
    B = n_node.shape[0]
    H = HIDDEN

    tile_n = _pick_tile(N)
    tile_e = _pick_tile(E)
    tile_e_agg = min(tile_e, 256)          # cap the in-flight one-hot width
    Np = _round_up(N, tile_n)
    Ep = _round_up(E, tile_e)

    # ---- sort edges by receiver ONCE so each node tile owns a contiguous band ----
    order = jnp.argsort(receivers)
    senders_s = senders[order]
    receivers_s = receivers[order]

    # Per-node-tile [first_edge_tile, num_edge_tiles] band table (scalar prefetch).
    n_node_tiles = Np // tile_n
    bounds = jnp.searchsorted(
        receivers_s,
        jnp.arange(n_node_tiles + 1, dtype=jnp.int32) * tile_n,
        side="left").astype(jnp.int32)
    e_lo, e_hi = bounds[:-1], bounds[1:]
    t_lo = e_lo // tile_e_agg
    t_hi = (e_hi + tile_e_agg - 1) // tile_e_agg
    band_len = jnp.where(e_hi > e_lo, t_hi - t_lo, 0).astype(jnp.int32)
    band_start = jnp.where(band_len > 0, t_lo, 0).astype(jnp.int32)

    # ---- pad ONCE; everything below stays padded & feature-major -----------------
    atom_onehot = jnp.zeros((VOCAB, Np), jnp.bfloat16).at[:, :N].set(
        jax.nn.one_hot(atomic_numbers, VOCAB, dtype=jnp.bfloat16).T)
    send_g = jnp.zeros((Ep,), jnp.int32).at[:E].set(senders_s)          # gather: pad -> node 0
    recv_g = jnp.zeros((Ep,), jnp.int32).at[:E].set(receivers_s)
    recv_scatter = jnp.full((Ep, 1), -1, jnp.int32).at[:E, 0].set(receivers_s)

    disp = positions[receivers_s] - positions[senders_s]                # [E, 3]
    dist = jnp.sqrt(jnp.sum(disp * disp, axis=-1, keepdims=True) + 1e-12)
    edge_raw = jnp.zeros((4, Ep), jnp.float32).at[:, :E].set(
        jnp.concatenate([disp, dist], axis=-1).T)

    # ---- base model (MoleculeGNS-style) -----------------------------------------
    node_feat = linear_silu(atom_onehot, params["W_emb_T"], params["b_emb"], tile_n)
    edge_feat = linear_silu(edge_raw, params["W_edge_T"], params["b_edge"], tile_e)

    for layer in params["mp"]:
        # Gathers + concat stay in XLA; the kernel sees one K=96 stream.
        x_edge = jnp.concatenate(
            [edge_feat, node_feat[:, send_g], node_feat[:, recv_g]], axis=0)
        edge_feat = edge_update(x_edge, layer, tile_e)
        node_feat = node_update(band_start, band_len, recv_scatter,
                                edge_feat, node_feat, layer, tile_n, tile_e_agg)

    # ---- heads (energy + forces packed; normalizers folded) ----------------------
    node_out = heads_forward(node_feat, params["heads"], tile_n)        # [4, Np] f32

    # Tiny per-graph mean pooling in XLA (keeps the heads kernel fully 'parallel';
    # guarded against graphs with zero nodes).
    seg_ids = jnp.repeat(jnp.arange(B, dtype=jnp.int32), n_node, total_repeat_length=N)
    seg_pad = jnp.zeros((Np,), jnp.int32).at[:N].set(seg_ids)
    valid = (jnp.arange(Np) < N).astype(jnp.float32)
    pooled = jax.ops.segment_sum((node_out * valid[None, :]).T, seg_pad,
                                 num_segments=B)                        # [B, 4]
    graph_mean = pooled / jnp.maximum(n_node.astype(jnp.float32)[:, None], 1.0)

    # TODO(synk): energy uses mean-pool (sum / n_node); some orb heads use sum with a
    #             reference-energy offset — match to the checkpoint's head config.
    return {
        "node_features": node_feat[:, :N].T.astype(jnp.float32),        # [N, H]
        "energy": graph_mean[:, 0:1],                                   # [B, 1]
        "forces": node_out[1:4, :N].T,                                  # [N, 3]
    }


# ----------------------------------------------------------------------------
# Example run
# ----------------------------------------------------------------------------
if __name__ == "__main__":
    key = jax.random.PRNGKey(0)
    k_params, k_atoms, k_pos = jax.random.split(key, 3)

    # Small synthetic AtomGraphs batch: 2 graphs with 10 and 14 nodes.
    nodes_per_graph = [10, 14]
    n_node = jnp.array(nodes_per_graph, dtype=jnp.int32)
    N = int(sum(nodes_per_graph))

    atomic_numbers = jax.random.randint(k_atoms, (N,), 1, VOCAB, dtype=jnp.int32)
    positions = jax.random.normal(k_pos, (N, 3), dtype=jnp.float32)

    # Deterministic ring connectivity within each graph (both directions).
    senders_np, receivers_np = [], []
    start = 0
    for n in nodes_per_graph:
        idx = np.arange(n)
        s = start + idx
        r = start + (idx + 1) % n
        senders_np += [s, r]
        receivers_np += [r, s]
        start += n
    senders = jnp.array(np.concatenate(senders_np), dtype=jnp.int32)
    receivers = jnp.array(np.concatenate(receivers_np), dtype=jnp.int32)

    params = prepare_params(init_params(k_params))

    fwd = jax.jit(graph_regressor_forward)
    out = fwd(params, atomic_numbers, positions, senders, receivers, n_node)
    jax.block_until_ready(out)

    assert out["node_features"].shape == (N, HIDDEN)
    assert out["energy"].shape == (len(nodes_per_graph), 1)
    assert out["forces"].shape == (N, 3)
    assert all(bool(jnp.all(jnp.isfinite(v))) for v in out.values())

    print("KERNEL_OK")
</pallas_src>

<mosaic_0001>
module attributes {stable_mosaic.version = 11 : i64} {
  func.func @_linear_silu_kernel(%arg0: i32, %arg1: memref<4x128xf32, #tpu.memory_space<vmem>>, %arg2: memref<32x4xbf16, #tpu.memory_space<vmem>>, %arg3: memref<32x1xf32, #tpu.memory_space<vmem>>, %arg4: memref<32x128xbf16, #tpu.memory_space<vmem>>) attributes {dimension_semantics = [#tpu.dimension_semantics<parallel>], iteration_bounds = array<i64: 1>, scalar_prefetch = 0 : i64, scratch_operands = 0 : i64, tpu.core_type = #tpu.core_type<tc>, window_params = [{transform_indices = @transform_0, window_bounds = array<i64: 4, 128>}, {pipeline_mode = #tpu.pipeline_mode<synchronous>, transform_indices = @transform_1, window_bounds = array<i64: 32, 4>}, {pipeline_mode = #tpu.pipeline_mode<synchronous>, transform_indices = @transform_2, window_bounds = array<i64: 32, 1>}, {transform_indices = @transform_3, window_bounds = array<i64: 32, 128>}]} {
    %c0 = arith.constant 0 : index
    %c0_0 = arith.constant 0 : index
    %0 = vector.load %arg2[%c0, %c0_0] : memref<32x4xbf16, #tpu.memory_space<vmem>>, vector<32x4xbf16>
    %c0_1 = arith.constant 0 : index
    %c0_2 = arith.constant 0 : index
    %1 = vector.load %arg1[%c0_1, %c0_2] : memref<4x128xf32, #tpu.memory_space<vmem>>, vector<4x128xf32>
    %2 = arith.truncf %1 : vector<4x128xf32> to vector<4x128xbf16>
    %cst = arith.constant dense<0.000000e+00> : vector<32x128xf32>
    %3 = tpu.matmul %0, %2, %cst {dimension_numbers = #tpu.dot_dimension_numbers<[1], [0], [0], [1], [0, 0, 1, 1], [], []>} : vector<32x4xbf16>, vector<4x128xbf16>, vector<32x128xf32> -> vector<32x128xf32>
    %c0_3 = arith.constant 0 : index
    %c0_4 = arith.constant 0 : index
    %4 = vector.load %arg3[%c0_3, %c0_4] : memref<32x1xf32, #tpu.memory_space<vmem>>, vector<32x1xf32>
    %5 = vector.broadcast %4 : vector<32x1xf32> to vector<32x128xf32>
    %6 = arith.addf %3, %5 : vector<32x128xf32>
    %cst_5 = arith.constant 0.000000e+00 : f32
    %7 = vector.broadcast %cst_5 : f32 to vector<32x128xf32>
    %8 = arith.subf %7, %6 : vector<32x128xf32>
    %9 = math.exp %8 : vector<32x128xf32>
    %cst_6 = arith.constant 1.000000e+00 : f32
    %10 = vector.broadcast %cst_6 : f32 to vector<32x128xf32>
    %11 = arith.addf %10, %9 : vector<32x128xf32>
    %12 = tpu.reciprocal %11 {approx = true} : vector<32x128xf32> -> vector<32x128xf32>
    %13 = arith.mulf %6, %12 : vector<32x128xf32>
    %14 = arith.truncf %13 : vector<32x128xf32> to vector<32x128xbf16>
    %c0_7 = arith.constant 0 : index
    %c0_8 = arith.constant 0 : index
    %15 = vector.load %arg4[%c0_7, %c0_8] : memref<32x128xbf16, #tpu.memory_space<vmem>>, vector<32x128xbf16>
    tpu.vector_store %arg4[%c0_7, %c0_8], %14 {strides = array<i32>} : memref<32x128xbf16, #tpu.memory_space<vmem>>, vector<32x128xbf16>,
    return
  }
  func.func @transform_0(%arg0: i32) -> (i32, i32) {
    %c0_i32 = arith.constant 0 : i32
    %c0_i32_0 = arith.constant 0 : i32
    return %c0_i32, %arg0 : i32, i32
  }
  func.func @transform_1(%arg0: i32) -> (i32, i32) {
    %c0_i32 = arith.constant 0 : i32
    %c0_i32_0 = arith.constant 0 : i32
    %c0_i32_1 = arith.constant 0 : i32
    return %c0_i32, %c0_i32_0 : i32, i32
  }
  func.func @transform_2(%arg0: i32) -> (i32, i32) {
    %c0_i32 = arith.constant 0 : i32
    %c0_i32_0 = arith.constant 0 : i32
    %c0_i32_1 = arith.constant 0 : i32
    return %c0_i32, %c0_i32_0 : i32, i32
  }
  func.func @transform_3(%arg0: i32) -> (i32, i32) {
    %c0_i32 = arith.constant 0 : i32
    %c0_i32_0 = arith.constant 0 : i32
    return %c0_i32, %arg0 : i32, i32
  }
}

module attributes {stable_mosaic.version = 11 : i64} {
  func.func @_linear_silu_kernel(%arg0: i32, %arg1: memref<16x128xbf16, #tpu.memory_space<vmem>>, %arg2: memref<32x16xbf16, #tpu.memory_space<vmem>>, %arg3: memref<32x1xf32, #tpu.memory_space<vmem>>, %arg4: memref<32x128xbf16, #tpu.memory_space<vmem>>) attributes {dimension_semantics = [#tpu.dimension_semantics<parallel>], iteration_bounds = array<i64: 1>, scalar_prefetch = 0 : i64, scratch_operands = 0 : i64, tpu.core_type = #tpu.core_type<tc>, window_params = [{transform_indices = @transform_0, window_bounds = array<i64: 16, 128>}, {pipeline_mode = #tpu.pipeline_mode<synchronous>, transform_indices = @transform_1, window_bounds = array<i64: 32, 16>}, {pipeline_mode = #tpu.pipeline_mode<synchronous>, transform_indices = @transform_2, window_bounds = array<i64: 32, 1>}, {transform_indices = @transform_3, window_bounds = array<i64: 32, 128>}]} {
    %c0 = arith.constant 0 : index
    %c0_0 = arith.constant 0 : index
    %0 = vector.load %arg2[%c0, %c0_0] : memref<32x16xbf16, #tpu.memory_space<vmem>>, vector<32x16xbf16>
    %c0_1 = arith.constant 0 : index
    %c0_2 = arith.constant 0 : index
    %1 = vector.load %arg1[%c0_1, %c0_2] : memref<16x128xbf16, #tpu.memory_space<vmem>>, vector<16x128xbf16>
    %cst = arith.constant dense<0.000000e+00> : vector<32x128xf32>
    %2 = tpu.matmul %0, %1, %cst {dimension_numbers = #tpu.dot_dimension_numbers<[1], [0], [0], [1], [0, 0, 1, 1], [], []>} : vector<32x16xbf16>, vector<16x128xbf16>, vector<32x128xf32> -> vector<32x128xf32>
    %c0_3 = arith.constant 0 : index
    %c0_4 = arith.constant 0 : index
    %3 = vector.load %arg3[%c0_3, %c0_4] : memref<32x1xf32, #tpu.memory_space<vmem>>, vector<32x1xf32>
    %4 = vector.broadcast %3 : vector<32x1xf32> to vector<32x128xf32>
    %5 = arith.addf %2, %4 : vector<32x128xf32>
    %cst_5 = arith.constant 0.000000e+00 : f32
    %6 = vector.broadcast %cst_5 : f32 to vector<32x128xf32>
    %7 = arith.subf %6, %5 : vector<32x128xf32>
    %8 = math.exp %7 : vector<32x128xf32>
    %cst_6 = arith.constant 1.000000e+00 : f32
    %9 = vector.broadcast %cst_6 : f32 to vector<32x128xf32>
    %10 = arith.addf %9, %8 : vector<32x128xf32>
    %11 = tpu.reciprocal %10 {approx = true} : vector<32x128xf32> -> vector<32x128xf32>
    %12 = arith.mulf %5, %11 : vector<32x128xf32>
    %13 = arith.truncf %12 : vector<32x128xf32> to vector<32x128xbf16>
    %c0_7 = arith.constant 0 : index
    %c0_8 = arith.constant 0 : index
    %14 = vector.load %arg4[%c0_7, %c0_8] : memref<32x128xbf16, #tpu.memory_space<vmem>>, vector<32x128xbf16>
    tpu.vector_store %arg4[%c0_7, %c0_8], %13 {strides = array<i32>} : memref<32x128xbf16, #tpu.memory_space<vmem>>, vector<32x128xbf16>,
    return
  }
  func.func @transform_0(%arg0: i32) -> (i32, i32) {
    %c0_i32 = arith.constant 0 : i32
    %c0_i32_0 = arith.constant 0 : i32
    return %c0_i32, %arg0 : i32, i32
  }
  func.func @transform_1(%arg0: i32) -> (i32, i32) {
    %c0_i32 = arith.constant 0 : i32
    %c0_i32_0 = arith.constant 0 : i32
    %c0_i32_1 = arith.constant 0 : i32
    return %c0_i32, %c0_i32_0 : i32, i32
  }
  func.func @transform_2(%arg0: i32) -> (i32, i32) {
    %c0_i32 = arith.constant 0 : i32
    %c0_i32_0 = arith.constant 0 : i32
    %c0_i32_1 = arith.constant 0 : i32
    return %c0_i32, %c0_i32_0 : i32, i32
  }
  func.func @transform_3(%arg0: i32) -> (i32, i32) {
    %c0_i32 = arith.constant 0 : i32
    %c0_i32_0 = arith.constant 0 : i32
    return %c0_i32, %arg0 : i32, i32
  }
}

module attributes {stable_mosaic.version = 11 : i64} {
  func.func @_edge_update_kernel(%arg0: i32, %arg1: memref<96x128xbf16, #tpu.memory_space<vmem>>, %arg2: memref<32x96xbf16, #tpu.memory_space<vmem>>, %arg3: memref<32x1xf32, #tpu.memory_space<vmem>>, %arg4: memref<32x32xbf16, #tpu.memory_space<vmem>>, %arg5: memref<32x1xf32, #tpu.memory_space<vmem>>, %arg6: memref<32x128xbf16, #tpu.memory_space<vmem>>) attributes {dimension_semantics = [#tpu.dimension_semantics<parallel>], iteration_bounds = array<i64: 1>, scalar_prefetch = 0 : i64, scratch_operands = 0 : i64, tpu.core_type = #tpu.core_type<tc>, window_params = [{transform_indices = @transform_0, window_bounds = array<i64: 96, 128>}, {pipeline_mode = #tpu.pipeline_mode<synchronous>, transform_indices = @transform_1, window_bounds = array<i64: 32, 96>}, {pipeline_mode = #tpu.pipeline_mode<synchronous>, transform_indices = @transform_2, window_bounds = array<i64: 32, 1>}, {pipeline_mode = #tpu.pipeline_mode<synchronous>, transform_indices = @transform_3, window_bounds = array<i64: 32, 32>}, {pipeline_mode = #tpu.pipeline_mode<synchronous>, transform_indices = @transform_4, window_bounds = array<i64: 32, 1>}, {transform_indices = @transform_5, window_bounds = array<i64: 32, 128>}]} {
    %c0 = arith.constant 0 : index
    %c0_0 = arith.constant 0 : index
    %0 = vector.load %arg1[%c0, %c0_0] : memref<96x128xbf16, #tpu.memory_space<vmem>>, vector<96x128xbf16>
    %c0_1 = arith.constant 0 : index
    %c0_2 = arith.constant 0 : index
    %1 = vector.load %arg2[%c0_1, %c0_2] : memref<32x96xbf16, #tpu.memory_space<vmem>>, vector<32x96xbf16>
    %cst = arith.constant dense<0.000000e+00> : vector<32x128xf32>
    %2 = tpu.matmul %1, %0, %cst {dimension_numbers = #tpu.dot_dimension_numbers<[1], [0], [0], [1], [0, 0, 1, 1], [], []>} : vector<32x96xbf16>, vector<96x128xbf16>, vector<32x128xf32> -> vector<32x128xf32>
    %c0_3 = arith.constant 0 : index
    %c0_4 = arith.constant 0 : index
    %3 = vector.load %arg3[%c0_3, %c0_4] : memref<32x1xf32, #tpu.memory_space<vmem>>, vector<32x1xf32>
    %4 = vector.broadcast %3 : vector<32x1xf32> to vector<32x128xf32>
    %5 = arith.addf %2, %4 : vector<32x128xf32>
    %cst_5 = arith.constant 0.000000e+00 : f32
    %6 = vector.broadcast %cst_5 : f32 to vector<32x128xf32>
    %7 = arith.subf %6, %5 : vector<32x128xf32>
    %8 = math.exp %7 : vector<32x128xf32>
    %cst_6 = arith.constant 1.000000e+00 : f32
    %9 = vector.broadcast %cst_6 : f32 to vector<32x128xf32>
    %10 = arith.addf %9, %8 : vector<32x128xf32>
    %11 = tpu.reciprocal %10 {approx = true} : vector<32x128xf32> -> vector<32x128xf32>
    %12 = arith.mulf %5, %11 : vector<32x128xf32>
    %c0_7 = arith.constant 0 : index
    %c0_8 = arith.constant 0 : index
    %13 = vector.load %arg4[%c0_7, %c0_8] : memref<32x32xbf16, #tpu.memory_space<vmem>>, vector<32x32xbf16>
    %14 = arith.truncf %12 : vector<32x128xf32> to vector<32x128xbf16>
    %cst_9 = arith.constant dense<0.000000e+00> : vector<32x128xf32>
    %15 = tpu.matmul %13, %14, %cst_9 {dimension_numbers = #tpu.dot_dimension_numbers<[1], [0], [0], [1], [0, 0, 1, 1], [], []>} : vector<32x32xbf16>, vector<32x128xbf16>, vector<32x128xf32> -> vector<32x128xf32>
    %c0_10 = arith.constant 0 : index
    %c0_11 = arith.constant 0 : index
    %16 = vector.load %arg5[%c0_10, %c0_11] : memref<32x1xf32, #tpu.memory_space<vmem>>, vector<32x1xf32>
    %17 = vector.broadcast %16 : vector<32x1xf32> to vector<32x128xf32>
    %18 = arith.addf %15, %17 : vector<32x128xf32>
    %19 = vector.extract_strided_slice %0 {offsets = [0, 0], sizes = [32, 128], strides = [1, 1]} : vector<96x128xbf16> to vector<32x128xbf16>
    %20 = arith.extf %19 : vector<32x128xbf16> to vector<32x128xf32>
    %21 = arith.addf %20, %18 : vector<32x128xf32>
    %22 = arith.truncf %21 : vector<32x128xf32> to vector<32x128xbf16>
    %c0_12 = arith.constant 0 : index
    %c0_13 = arith.constant 0 : index
    %23 = vector.load %arg6[%c0_12, %c0_13] : memref<32x128xbf16, #tpu.memory_space<vmem>>, vector<32x128xbf16>
    tpu.vector_store %arg6[%c0_12, %c0_13], %22 {strides = array<i32>} : memref<32x128xbf16, #tpu.memory_space<vmem>>, vector<32x128xbf16>,
    return
  }
  func.func @transform_0(%arg0: i32) -> (i32, i32) {
    %c0_i32 = arith.constant 0 : i32
    %c0_i32_0 = arith.constant 0 : i32
    return %c0_i32, %arg0 : i32, i32
  }
  func.func @transform_1(%arg0: i32) -> (i32, i32) {
    %c0_i32 = arith.constant 0 : i32
    %c0_i32_0 = arith.constant 0 : i32
    %c0_i32_1 = arith.constant 0 : i32
    return %c0_i32, %c0_i32_0 : i32, i32
  }
  func.func @transform_2(%arg0: i32) -> (i32, i32) {
    %c0_i32 = arith.constant 0 : i32
    %c0_i32_0 = arith.constant 0 : i32
    %c0_i32_1 = arith.constant 0 : i32
    return %c0_i32, %c0_i32_0 : i32, i32
  }
  func.func @transform_3(%arg0: i32) -> (i32, i32) {
    %c0_i32 = arith.constant 0 : i32
    %c0_i32_0 = arith.constant 0 : i32
    %c0_i32_1 = arith.constant 0 : i32
    return %c0_i32, %c0_i32_0 : i32, i32
  }
  func.func @transform_4(%arg0: i32) -> (i32, i32) {
    %c0_i32 = arith.constant 0 : i32
    %c0_i32_0 = arith.constant 0 : i32
    %c0_i32_1 = arith.constant 0 : i32
    return %c0_i32, %c0_i32_0 : i32, i32
  }
  func.func @transform_5(%arg0: i32) -> (i32, i32) {
    %c0_i32 = arith.constant 0 : i32
    %c0_i32_0 = arith.constant 0 : i32
    return %c0_i32, %arg0 : i32, i32
  }
}

module attributes {stable_mosaic.version = 11 : i64} {
  func.func @_node_update_kernel(%arg0: i32, %arg1: i32, %arg2: memref<1xi32, #tpu.memory_space<smem>>, %arg3: memref<1xi32, #tpu.memory_space<smem>>, %arg4: memref<128x1xi32, #tpu.memory_space<vmem>>, %arg5: memref<32x128xbf16, #tpu.memory_space<vmem>>, %arg6: memref<32x128xbf16, #tpu.memory_space<vmem>>, %arg7: memref<32x32xbf16, #tpu.memory_space<vmem>>, %arg8: memref<32x32xbf16, #tpu.memory_space<vmem>>, %arg9: memref<32x1xf32, #tpu.memory_space<vmem>>, %arg10: memref<32x32xbf16, #tpu.memory_space<vmem>>, %arg11: memref<32x1xf32, #tpu.memory_space<vmem>>, %arg12: memref<32x128xbf16, #tpu.memory_space<vmem>>, %arg13: memref<32x128xf32, #tpu.memory_space<vmem>>) attributes {dimension_semantics = [#tpu.dimension_semantics<parallel>, #tpu.dimension_semantics<arbitrary>], iteration_bounds = array<i64: 1, 1>, scalar_prefetch = 2 : i64, scratch_operands = 1 : i64, tpu.core_type = #tpu.core_type<tc>, window_params = [{transform_indices = @transform_0, window_bounds = array<i64: 128, 1>}, {transform_indices = @transform_1, window_bounds = array<i64: 32, 128>}, {transform_indices = @transform_2, window_bounds = array<i64: 32, 128>}, {pipeline_mode = #tpu.pipeline_mode<synchronous>, transform_indices = @transform_3, window_bounds = array<i64: 32, 32>}, {pipeline_mode = #tpu.pipeline_mode<synchronous>, transform_indices = @transform_4, window_bounds = array<i64: 32, 32>}, {pipeline_mode = #tpu.pipeline_mode<synchronous>, transform_indices = @transform_5, window_bounds = array<i64: 32, 1>}, {pipeline_mode = #tpu.pipeline_mode<synchronous>, transform_indices = @transform_6, window_bounds = array<i64: 32, 32>}, {pipeline_mode = #tpu.pipeline_mode<synchronous>, transform_indices = @transform_7, window_bounds = array<i64: 32, 1>}, {transform_indices = @transform_8, window_bounds = array<i64: 32, 128>}]} {
    %c0_i32 = arith.constant 0 : i32
    %0 = arith.cmpi eq, %arg1, %c0_i32 : i32
    %1 = arith.extui %0 : i1 to i32
    %c0_i32_0 = arith.constant 0 : i32
    %2 = arith.cmpi ne, %1, %c0_i32_0 : i32
    scf.if %2 {
      %cst = arith.constant 0.000000e+00 : f32
      %11 = vector.broadcast %cst : f32 to vector<32x128xf32>
      %c0 = arith.constant 0 : index
      %c0_4 = arith.constant 0 : index
      %12 = vector.load %arg13[%c0, %c0_4] : memref<32x128xf32, #tpu.memory_space<vmem>>, vector<32x128xf32>
      tpu.vector_store %arg13[%c0, %c0_4], %11 {strides = array<i32>} : memref<32x128xf32, #tpu.memory_space<vmem>>, vector<32x128xf32>,
    } else {
    }
    %3 = arith.index_cast %arg0 : i32 to index
    %4 = memref.load %arg3[%3] : memref<1xi32, #tpu.memory_space<smem>>
    %5 = arith.cmpi slt, %arg1, %4 : i32
    %6 = arith.extui %5 : i1 to i32
    %c0_i32_1 = arith.constant 0 : i32
    %7 = arith.cmpi ne, %6, %c0_i32_1 : i32
    scf.if %7 {
      %c128_i32 = arith.constant 128 : i32
      %11 = arith.muli %arg0, %c128_i32 : i32
      %12 = tpu.iota {dimensions = array<i32: 1>} : vector<128x128xi32>
      %13 = vector.broadcast %11 : i32 to vector<128x128xi32>
      %14 = arith.addi %13, %12 : vector<128x128xi32>
      %c0 = arith.constant 0 : index
      %c0_4 = arith.constant 0 : index
      %15 = vector.load %arg4[%c0, %c0_4] : memref<128x1xi32, #tpu.memory_space<vmem>>, vector<128x1xi32>
      %16 = vector.broadcast %15 : vector<128x1xi32> to vector<128x128xi32>
      %17 = arith.cmpi eq, %16, %14 : vector<128x128xi32>
      %18 = arith.extui %17 : vector<128x128xi1> to vector<128x128xi32>
      %19 = arith.sitofp %18 : vector<128x128xi32> to vector<128x128xf32>
      %20 = arith.truncf %19 : vector<128x128xf32> to vector<128x128xbf16>
      %c0_5 = arith.constant 0 : index
      %c0_6 = arith.constant 0 : index
      %21 = vector.load %arg13[%c0_5, %c0_6] : memref<32x128xf32, #tpu.memory_space<vmem>>, vector<32x128xf32>
      %c0_7 = arith.constant 0 : index
      %c0_8 = arith.constant 0 : index
      %22 = vector.load %arg5[%c0_7, %c0_8] : memref<32x128xbf16, #tpu.memory_space<vmem>>, vector<32x128xbf16>
      %cst = arith.constant dense<0.000000e+00> : vector<32x128xf32>
      %23 = tpu.matmul %22, %20, %cst {dimension_numbers = #tpu.dot_dimension_numbers<[1], [0], [0], [1], [0, 0, 1, 1], [], []>} : vector<32x128xbf16>, vector<128x128xbf16>, vector<32x128xf32> -> vector<32x128xf32>
      %24 = arith.addf %21, %23 : vector<32x128xf32>
      %c0_9 = arith.constant 0 : index
      %c0_10 = arith.constant 0 : index
      %25 = vector.load %arg13[%c0_9, %c0_10] : memref<32x128xf32, #tpu.memory_space<vmem>>, vector<32x128xf32>
      tpu.vector_store %arg13[%c0_9, %c0_10], %24 {strides = array<i32>} : memref<32x128xf32, #tpu.memory_space<vmem>>, vector<32x128xf32>,
    } else {
    }
    %c0_i32_2 = arith.constant 0 : i32
    %8 = arith.cmpi eq, %arg1, %c0_i32_2 : i32
    %9 = arith.extui %8 : i1 to i32
    %c0_i32_3 = arith.constant 0 : i32
    %10 = arith.cmpi ne, %9, %c0_i32_3 : i32
    scf.if %10 {
      %c0 = arith.constant 0 : index
      %c0_4 = arith.constant 0 : index
      %11 = vector.load %arg6[%c0, %c0_4] : memref<32x128xbf16, #tpu.memory_space<vmem>>, vector<32x128xbf16>
      %c0_5 = arith.constant 0 : index
      %c0_6 = arith.constant 0 : index
      %12 = vector.load %arg7[%c0_5, %c0_6] : memref<32x32xbf16, #tpu.memory_space<vmem>>, vector<32x32xbf16>
      %cst = arith.constant dense<0.000000e+00> : vector<32x128xf32>
      %13 = tpu.matmul %12, %11, %cst {dimension_numbers = #tpu.dot_dimension_numbers<[1], [0], [0], [1], [0, 0, 1, 1], [], []>} : vector<32x32xbf16>, vector<32x128xbf16>, vector<32x128xf32> -> vector<32x128xf32>
      %c0_7 = arith.constant 0 : index
      %c0_8 = arith.constant 0 : index
      %14 = vector.load %arg8[%c0_7, %c0_8] : memref<32x32xbf16, #tpu.memory_space<vmem>>, vector<32x32xbf16>
      %c0_9 = arith.constant 0 : index
      %c0_10 = arith.constant 0 : index
      %15 = vector.load %arg13[%c0_9, %c0_10] : memref<32x128xf32, #tpu.memory_space<vmem>>, vector<32x128xf32>
      %16 = arith.truncf %15 : vector<32x128xf32> to vector<32x128xbf16>
      %cst_11 = arith.constant dense<0.000000e+00> : vector<32x128xf32>
      %17 = tpu.matmul %14, %16, %cst_11 {dimension_numbers = #tpu.dot_dimension_numbers<[1], [0], [0], [1], [0, 0, 1, 1], [], []>} : vector<32x32xbf16>, vector<32x128xbf16>, vector<32x128xf32> -> vector<32x128xf32>
      %18 = arith.addf %13, %17 : vector<32x128xf32>
      %c0_12 = arith.constant 0 : index
      %c0_13 = arith.constant 0 : index
      %19 = vector.load %arg9[%c0_12, %c0_13] : memref<32x1xf32, #tpu.memory_space<vmem>>, vector<32x1xf32>
      %20 = vector.broadcast %19 : vector<32x1xf32> to vector<32x128xf32>
      %21 = arith.addf %18, %20 : vector<32x128xf32>
      %cst_14 = arith.constant 0.000000e+00 : f32
      %22 = vector.broadcast %cst_14 : f32 to vector<32x128xf32>
      %23 = arith.subf %22, %21 : vector<32x128xf32>
      %24 = math.exp %23 : vector<32x128xf32>
      %cst_15 = arith.constant 1.000000e+00 : f32
      %25 = vector.broadcast %cst_15 : f32 to vector<32x128xf32>
      %26 = arith.addf %25, %24 : vector<32x128xf32>
      %27 = tpu.reciprocal %26 {approx = true} : vector<32x128xf32> -> vector<32x128xf32>
      %28 = arith.mulf %21, %27 : vector<32x128xf32>
      %c0_16 = arith.constant 0 : index
      %c0_17 = arith.constant 0 : index
      %29 = vector.load %arg10[%c0_16, %c0_17] : memref<32x32xbf16, #tpu.memory_space<vmem>>, vector<32x32xbf16>
      %30 = arith.truncf %28 : vector<32x128xf32> to vector<32x128xbf16>
      %cst_18 = arith.constant dense<0.000000e+00> : vector<32x128xf32>
      %31 = tpu.matmul %29, %30, %cst_18 {dimension_numbers = #tpu.dot_dimension_numbers<[1], [0], [0], [1], [0, 0, 1, 1], [], []>} : vector<32x32xbf16>, vector<32x128xbf16>, vector<32x128xf32> -> vector<32x128xf32>
      %c0_19 = arith.constant 0 : index
      %c0_20 = arith.constant 0 : index
      %32 = vector.load %arg11[%c0_19, %c0_20] : memref<32x1xf32, #tpu.memory_space<vmem>>, vector<32x1xf32>
      %33 = vector.broadcast %32 : vector<32x1xf32> to vector<32x128xf32>
      %34 = arith.addf %31, %33 : vector<32x128xf32>
      %35 = arith.extf %11 : vector<32x128xbf16> to vector<32x128xf32>
      %36 = arith.addf %35, %34 : vector<32x128xf32>
      %37 = arith.truncf %36 : vector<32x128xf32> to vector<32x128xbf16>
      %c0_21 = arith.constant 0 : index
      %c0_22 = arith.constant 0 : index
      %38 = vector.load %arg12[%c0_21, %c0_22] : memref<32x128xbf16, #tpu.memory_space<vmem>>, vector<32x128xbf16>
      tpu.vector_store %arg12[%c0_21, %c0_22], %37 {strides = array<i32>} : memref<32x128xbf16, #tpu.memory_space<vmem>>, vector<32x128xbf16>,
    } else {
    }
    return
  }
  func.func @transform_0(%arg0: i32, %arg1: i32, %arg2: memref<1xi32, #tpu.memory_space<smem>>, %arg3: memref<1xi32, #tpu.memory_space<smem>>) -> (i32, i32) {
    %0 = arith.index_cast %arg0 : i32 to index
    %1 = memref.load %arg3[%0] : memref<1xi32, #tpu.memory_space<smem>>
    %c1_i32 = arith.constant 1 : i32
    %2 = arith.subi %1, %c1_i32 : i32
    %c0_i32 = arith.constant 0 : i32
    %3 = arith.maxsi %2, %c0_i32 : i32
    %4 = arith.index_cast %arg0 : i32 to index
    %5 = memref.load %arg3[%4] : memref<1xi32, #tpu.memory_space<smem>>
    %c0_i32_0 = arith.constant 0 : i32
    %6 = arith.cmpi sgt, %5, %c0_i32_0 : i32
    %7 = arith.index_cast %arg0 : i32 to index
    %8 = memref.load %arg2[%7] : memref<1xi32, #tpu.memory_space<smem>>
    %9 = arith.minsi %arg1, %3 : i32
    %10 = arith.addi %8, %9 : i32
    %c0_i32_1 = arith.constant 0 : i32
    %11 = arith.select %6, %10, %c0_i32_1 : i32
    %c0_i32_2 = arith.constant 0 : i32
    %c0_i32_3 = arith.constant 0 : i32
    return %11, %c0_i32_2 : i32, i32
  }
  func.func @transform_1(%arg0: i32, %arg1: i32, %arg2: memref<1xi32, #tpu.memory_space<smem>>, %arg3: memref<1xi32, #tpu.memory_space<smem>>) -> (i32, i32) {
    %0 = arith.index_cast %arg0 : i32 to index
    %1 = memref.load %arg3[%0] : memref<1xi32, #tpu.memory_space<smem>>
    %c1_i32 = arith.constant 1 : i32
    %2 = arith.subi %1, %c1_i32 : i32
    %c0_i32 = arith.constant 0 : i32
    %3 = arith.maxsi %2, %c0_i32 : i32
    %4 = arith.index_cast %arg0 : i32 to index
    %5 = memref.load %arg3[%4] : memref<1xi32, #tpu.memory_space<smem>>
    %c0_i32_0 = arith.constant 0 : i32
    %6 = arith.cmpi sgt, %5, %c0_i32_0 : i32
    %7 = arith.index_cast %arg0 : i32 to index
    %8 = memref.load %arg2[%7] : memref<1xi32, #tpu.memory_space<smem>>
    %9 = arith.minsi %arg1, %3 : i32
    %10 = arith.addi %8, %9 : i32
    %c0_i32_1 = arith.constant 0 : i32
    %11 = arith.select %6, %10, %c0_i32_1 : i32
    %c0_i32_2 = arith.constant 0 : i32
    %c0_i32_3 = arith.constant 0 : i32
    return %c0_i32_2, %11 : i32, i32
  }
  func.func @transform_2(%arg0: i32, %arg1: i32, %arg2: memref<1xi32, #tpu.memory_space<smem>>, %arg3: memref<1xi32, #tpu.memory_space<smem>>) -> (i32, i32) {
    %c0_i32 = arith.constant 0 : i32
    %c0_i32_0 = arith.constant 0 : i32
    return %c0_i32, %arg0 : i32, i32
  }
  func.func @transform_3(%arg0: i32, %arg1: i32, %arg2: memref<1xi32, #tpu.memory_space<smem>>, %arg3: memref<1xi32, #tpu.memory_space<smem>>) -> (i32, i32) {
    %c0_i32 = arith.constant 0 : i32
    %c0_i32_0 = arith.constant 0 : i32
    %c0_i32_1 = arith.constant 0 : i32
    return %c0_i32, %c0_i32_0 : i32, i32
  }
  func.func @transform_4(%arg0: i32, %arg1: i32, %arg2: memref<1xi32, #tpu.memory_space<smem>>, %arg3: memref<1xi32, #tpu.memory_space<smem>>) -> (i32, i32) {
    %c0_i32 = arith.constant 0 : i32
    %c0_i32_0 = arith.constant 0 : i32
    %c0_i32_1 = arith.constant 0 : i32
    return %c0_i32, %c0_i32_0 : i32, i32
  }
  func.func @transform_5(%arg0: i32, %arg1: i32, %arg2: memref<1xi32, #tpu.memory_space<smem>>, %arg3: memref<1xi32, #tpu.memory_space<smem>>) -> (i32, i32) {
    %c0_i32 = arith.constant 0 : i32
    %c0_i32_0 = arith.constant 0 : i32
    %c0_i32_1 = arith.constant 0 : i32
    return %c0_i32, %c0_i32_0 : i32, i32
  }
  func.func @transform_6(%arg0: i32, %arg1: i32, %arg2: memref<1xi32, #tpu.memory_space<smem>>, %arg3: memref<1xi32, #tpu.memory_space<smem>>) -> (i32, i32) {
    %c0_i32 = arith.constant 0 : i32
    %c0_i32_0 = arith.constant 0 : i32
    %c0_i32_1 = arith.constant 0 : i32
    return %c0_i32, %c0_i32_0 : i32, i32
  }
  func.func @transform_7(%arg0: i32, %arg1: i32, %arg2: memref<1xi32, #tpu.memory_space<smem>>, %arg3: memref<1xi32, #tpu.memory_space<smem>>) -> (i32, i32) {
    %c0_i32 = arith.constant 0 : i32
    %c0_i32_0 = arith.constant 0 : i32
    %c0_i32_1 = arith.constant 0 : i32
    return %c0_i32, %c0_i32_0 : i32, i32
  }
  func.func @transform_8(%arg0: i32, %arg1: i32, %arg2: memref<1xi32, #tpu.memory_space<smem>>, %arg3: memref<1xi32, #tpu.memory_space<smem>>) -> (i32, i32) {
    %c0_i32 = arith.constant 0 : i32
    %c0_i32_0 = arith.constant 0 : i32
    return %c0_i32, %arg0 : i32, i32
  }
}

module attributes {stable_mosaic.version = 11 : i64} {
  func.func @_heads_kernel(%arg0: i32, %arg1: memref<32x128xbf16, #tpu.memory_space<vmem>>, %arg2: memref<64x32xbf16, #tpu.memory_space<vmem>>, %arg3: memref<64x1xf32, #tpu.memory_space<vmem>>, %arg4: memref<4x64xbf16, #tpu.memory_space<vmem>>, %arg5: memref<4x1xf32, #tpu.memory_space<vmem>>, %arg6: memref<4x128xf32, #tpu.memory_space<vmem>>) attributes {dimension_semantics = [#tpu.dimension_semantics<parallel>], iteration_bounds = array<i64: 1>, scalar_prefetch = 0 : i64, scratch_operands = 0 : i64, tpu.core_type = #tpu.core_type<tc>, window_params = [{transform_indices = @transform_0, window_bounds = array<i64: 32, 128>}, {pipeline_mode = #tpu.pipeline_mode<synchronous>, transform_indices = @transform_1, window_bounds = array<i64: 64, 32>}, {pipeline_mode = #tpu.pipeline_mode<synchronous>, transform_indices = @transform_2, window_bounds = array<i64: 64, 1>}, {pipeline_mode = #tpu.pipeline_mode<synchronous>, transform_indices = @transform_3, window_bounds = array<i64: 4, 64>}, {pipeline_mode = #tpu.pipeline_mode<synchronous>, transform_indices = @transform_4, window_bounds = array<i64: 4, 1>}, {transform_indices = @transform_5, window_bounds = array<i64: 4, 128>}]} {
    %c0 = arith.constant 0 : index
    %c0_0 = arith.constant 0 : index
    %0 = vector.load %arg2[%c0, %c0_0] : memref<64x32xbf16, #tpu.memory_space<vmem>>, vector<64x32xbf16>
    %c0_1 = arith.constant 0 : index
    %c0_2 = arith.constant 0 : index
    %1 = vector.load %arg1[%c0_1, %c0_2] : memref<32x128xbf16, #tpu.memory_space<vmem>>, vector<32x128xbf16>
    %cst = arith.constant dense<0.000000e+00> : vector<64x128xf32>
    %2 = tpu.matmul %0, %1, %cst {dimension_numbers = #tpu.dot_dimension_numbers<[1], [0], [0], [1], [0, 0, 1, 1], [], []>} : vector<64x32xbf16>, vector<32x128xbf16>, vector<64x128xf32> -> vector<64x128xf32>
    %c0_3 = arith.constant 0 : index
    %c0_4 = arith.constant 0 : index
    %3 = vector.load %arg3[%c0_3, %c0_4] : memref<64x1xf32, #tpu.memory_space<vmem>>, vector<64x1xf32>
    %4 = vector.broadcast %3 : vector<64x1xf32> to vector<64x128xf32>
    %5 = arith.addf %2, %4 : vector<64x128xf32>
    %cst_5 = arith.constant 0.000000e+00 : f32
    %6 = vector.broadcast %cst_5 : f32 to vector<64x128xf32>
    %7 = arith.subf %6, %5 : vector<64x128xf32>
    %8 = math.exp %7 : vector<64x128xf32>
    %cst_6 = arith.constant 1.000000e+00 : f32
    %9 = vector.broadcast %cst_6 : f32 to vector<64x128xf32>
    %10 = arith.addf %9, %8 : vector<64x128xf32>
    %11 = tpu.reciprocal %10 {approx = true} : vector<64x128xf32> -> vector<64x128xf32>
    %12 = arith.mulf %5, %11 : vector<64x128xf32>
    %c0_7 = arith.constant 0 : index
    %c0_8 = arith.constant 0 : index
    %13 = vector.load %arg4[%c0_7, %c0_8] : memref<4x64xbf16, #tpu.memory_space<vmem>>, vector<4x64xbf16>
    %14 = arith.truncf %12 : vector<64x128xf32> to vector<64x128xbf16>
    %cst_9 = arith.constant dense<0.000000e+00> : vector<4x128xf32>
    %15 = tpu.matmul %13, %14, %cst_9 {dimension_numbers = #tpu.dot_dimension_numbers<[1], [0], [0], [1], [0, 0, 1, 1], [], []>} : vector<4x64xbf16>, vector<64x128xbf16>, vector<4x128xf32> -> vector<4x128xf32>
    %c0_10 = arith.constant 0 : index
    %c0_11 = arith.constant 0 : index
    %16 = vector.load %arg5[%c0_10, %c0_11] : memref<4x1xf32, #tpu.memory_space<vmem>>, vector<4x1xf32>
    %17 = vector.broadcast %16 : vector<4x1xf32> to vector<4x128xf32>
    %18 = arith.addf %15, %17 : vector<4x128xf32>
    %c0_12 = arith.constant 0 : index
    %c0_13 = arith.constant 0 : index
    %19 = vector.load %arg6[%c0_12, %c0_13] : memref<4x128xf32, #tpu.memory_space<vmem>>, vector<4x128xf32>
    tpu.vector_store %arg6[%c0_12, %c0_13], %18 {strides = array<i32>} : memref<4x128xf32, #tpu.memory_space<vmem>>, vector<4x128xf32>,
    return
  }
  func.func @transform_0(%arg0: i32) -> (i32, i32) {
    %c0_i32 = arith.constant 0 : i32
    %c0_i32_0 = arith.constant 0 : i32
    return %c0_i32, %arg0 : i32, i32
  }
  func.func @transform_1(%arg0: i32) -> (i32, i32) {
    %c0_i32 = arith.constant 0 : i32
    %c0_i32_0 = arith.constant 0 : i32
    %c0_i32_1 = arith.constant 0 : i32
    return %c0_i32, %c0_i32_0 : i32, i32
  }
  func.func @transform_2(%arg0: i32) -> (i32, i32) {
    %c0_i32 = arith.constant 0 : i32
    %c0_i32_0 = arith.constant 0 : i32
    %c0_i32_1 = arith.constant 0 : i32
    return %c0_i32, %c0_i32_0 : i32, i32
  }
  func.func @transform_3(%arg0: i32) -> (i32, i32) {
    %c0_i32 = arith.constant 0 : i32
    %c0_i32_0 = arith.constant 0 : i32
    %c0_i32_1 = arith.constant 0 : i32
    return %c0_i32, %c0_i32_0 : i32, i32
  }
  func.func @transform_4(%arg0: i32) -> (i32, i32) {
    %c0_i32 = arith.constant 0 : i32
    %c0_i32_0 = arith.constant 0 : i32
    %c0_i32_1 = arith.constant 0 : i32
    return %c0_i32, %c0_i32_0 : i32, i32
  }
  func.func @transform_5(%arg0: i32) -> (i32, i32) {
    %c0_i32 = arith.constant 0 : i32
    %c0_i32_0 = arith.constant 0 : i32
    return %c0_i32, %arg0 : i32, i32
  }
}

</mosaic_0001>

<bundles_post_ra>
// kernel: custom-call
= control target key start
LH: loop header
LB: loop body
LE: loop exit
PB: predicated region body
PF: predicated region fallthrough
CT: control target
= control target key end

     0   :  { %s6_s0 = inlined_call_operand.vmem [shape: u32[2], index: 0, kind: output, shape index: {}]  }

// kernel: graph_regressor_forward.7
= control target key start
LH: loop header
LB: loop body
LE: loop exit
PB: predicated region body
PF: predicated region fallthrough
CT: control target
= control target key end

     0   :  { %v171_v2 = vmov 0   ;;  %vm61_vm0 = vcmask 130048   ;;  %s219_s0 = inlined_call_operand.vmem [shape: bf16[16,128], index: 0, kind: input, shape index: {}]   ;;  %s220_s1 = inlined_call_operand.vmem [shape: bf16[32,16], index: 1, kind: input, shape index: {}]   ;;  %s221_s2 = inlined_call_operand.vmem [shape: f32[32,1], index: 2, kind: input, shape index: {}]   ;;  %s222_s3 = inlined_call_operand.vmem [shape: bf16[32,128], index: 3, kind: output, shape index: {}]  }
   0x1   :  { %v139_v0 = vld [vmem:[%s219_s0] sm:$0xff]  ;;  %154 = vset.pattern.permute.xlu1 %v171_v2  ;;  %153 = vset.pattern.permute.xlu0 %v171_v2  ;;  %v138_v3 = vld [vmem:[%s220_s1 + $0x8] sm:$0xff]  ;;  %v23_v4 = vld [vmem:[%s221_s2 + $0x10] sm:$0xff] }
   0x2   :  { %v137_v1 = vld [vmem:[%s220_s1] sm:$0xff]  ;;  %75 = vmatpush.bf16.msra.mxu0 %v139_v0  ;;  %151 = vmatpush.bf16.msra.mxu1 %v139_v0  ;;  %v24_v6 = vld [vmem:[%s221_s2 + $0x18] sm:$0xff]  ;;  %v22_v7 = vld [vmem:[%s221_s2 + $0x8] sm:$0xff] }
   0x3   :  { %v21_v5 = vld [vmem:[%s221_s2] sm:$0xff]  ;;  %37 = vperm.xlu1 %154, %v23_v4  }
   0x4   :  { %27 = vperm.xlu0 %153, %v21_v5  }
   0x5   :  { %135 = vmatmul.msk.bf16.vlgmr.msra.gmra.mxu0 %vm61_vm0, %v137_v1  ;;  %136 = vmatmul.msk.bf16.vlgmr.msra.gmra.mxu1 %vm61_vm0, %v138_v3 }
   0xb   :  { %42 = vperm.xlu1 %154, %v24_v6  }
   0xc   :  { %32 = vperm.xlu0 %153, %v22_v7  }
  0x75   :  { %v38_v8 = vpop.permute.xlu1 %37 }
  0x76   :  { %v28_v9 = vpop.permute.xlu0 %27 }
  0x7d   :  { %v43_v17 = vpop.permute.xlu1 %42 }
  0x7e   :  { %v33_v18 = vpop.permute.xlu0 %32 }
  0x82   :  { %v77_v10 = vpop.f32.mrf.mxu0  ;;  %v82_v11 = vpop.f32.mrf.mxu1 }
  0x83   :  { %v78_v12 = vadd.f32 %v77_v10, %v28_v9  ;;  %v83_v13 = vadd.f32 %v82_v11, %v38_v8 }
  0x85   :  { %v87_v14 = vsub.f32 0.0, %v78_v12  ;;  %v89_v15 = vsub.f32 0.0, %v83_v13 }
  0x87   :  { %v91_v16 = vmul.f32 1.442695, %v87_v14  ;;  %v95_v19 = vmul.f32 1.442695, %v89_v15 }
  0x89   :  { %155 = vpow2.f32 %v91_v16 }
  0x8a   :  { %v79_v20 = vpop.f32.mrf.mxu0  ;;  %v84_v21 = vpop.f32.mrf.mxu1  ;;  %157 = vpow2.f32 %v95_v19 }
  0x8b   :  { %v80_v22 = vadd.f32 %v79_v20, %v33_v18  ;;  %v85_v23 = vadd.f32 %v84_v21, %v43_v17 }
  0x8d   :  { %v88_v24 = vsub.f32 0.0, %v80_v22  ;;  %v90_v25 = vsub.f32 0.0, %v85_v23 }
  0x8f   :  { %v93_v26 = vmul.f32 1.442695, %v88_v24  ;;  %v97_v27 = vmul.f32 1.442695, %v90_v25  ;;  %v156_v28 = vpop.eup %155 }
  0x90   :  { %v158_v29 = vpop.eup %157  ;;  %v99_v30 = vadd.f32 1.0, %v156_v28 }
  0x91   :  { %159 = vpow2.f32 %v93_v26  ;;  %v101_v32 = vadd.f32 1.0, %v158_v29 }
  0x92   :  { %161 = vpow2.f32 %v97_v27 }
  0x93   :  { %163 = vrcp.f32 %v99_v30 }
  0x97   :  { %v160_v31 = vpop.eup %159 }
  0x98   :  { %v100_v33 = vadd.f32 1.0, %v160_v31  ;;  %v162_v34 = vpop.eup %161 }
  0x99   :  { %v102_v35 = vadd.f32 1.0, %v162_v34  ;;  %v164_v36 = vpop.eup %163 }
  0x9a   :  { %165 = vrcp.f32 %v100_v33  ;;  %v107_v39 = vmul.f32 %v164_v36, %v78_v12 }
  0x9b   :  { %167 = vrcp.f32 %v101_v32 }
  0x9c   :  { %169 = vrcp.f32 %v102_v35 }
  0xa0   :  { %v166_v37 = vpop.eup %165 }
  0xa1   :  { %v168_v38 = vpop.eup %167  ;;  %v108_v40 = vmul.f32 %v166_v37, %v80_v22 }
  0xa2   :  { %v170_v41 = vpop.eup %169  ;;  %v109_v43 = vmul.f32 %v168_v38, %v83_v13 }
  0xa3   :  { %v143_v42 = vpack.c.bf16 %v108_v40, %v107_v39  ;;  %v110_v44 = vmul.f32 %v170_v41, %v85_v23 }
  0xa5   :  { %144 = vst [vmem:[%s222_s3] sm:$0xff] %v143_v42   ;;  %v148_v45 = vpack.c.bf16 %v110_v44, %v109_v43 }
  0xa7   :  { %150 = vst [vmem:[%s222_s3 + $0x8] sm:$0xff] %v148_v45  }

// kernel: graph_regressor_forward.8
= control target key start
LH: loop header
LB: loop body
LE: loop exit
PB: predicated region body
PF: predicated region fallthrough
CT: control target
= control target key end

     0   :  { %vm62_vm0 = vcmask 1041408   ;;  %v164_v1 = vmov 0   ;;  %vm55_vm1 = vcmask 31744   ;;  %s212_s0 = inlined_call_operand.vmem [shape: f32[4,128], index: 0, kind: input, shape index: {}]   ;;  %s213_s2 = inlined_call_operand.vmem [shape: f32[32,1], index: 2, kind: input, shape index: {}]   ;;  %s214_s1 = inlined_call_operand.vmem [shape: bf16[32,4], index: 1, kind: input, shape index: {}]   ;;  %s215_s3 = inlined_call_operand.vmem [shape: bf16[32,128], index: 3, kind: output, shape index: {}]  }
   0x1   :  { %v19_v0 = vld [vmem:[%s212_s0] sm:$0xf]  ;;  %147 = vset.pattern.permute.xlu1 %v164_v1  ;;  %146 = vset.pattern.permute.xlu0 %v164_v1  ;;  %v23_v3 = vld [vmem:[%s213_s2 + $0x10] sm:$0xff]  ;;  %v132_v7 = vld [vmem:[%s214_s1 + $0x8] sm:$0xff] }
   0x2   :  { %v20_v2 = vpack.c.bf16 %v19_v0, %v19_v0  ;;  %v21_v4 = vld [vmem:[%s213_s2] sm:$0xff]  ;;  %37 = vperm.xlu1 %147, %v23_v3   ;;  %v24_v8 = vld [vmem:[%s213_s2 + $0x18] sm:$0xff]  ;;  %v22_v9 = vld [vmem:[%s213_s2 + $0x8] sm:$0xff] }
   0x3   :  { %27 = vperm.xlu0 %146, %v21_v4   ;;  %v131_v6 = vld [vmem:[%s214_s1] sm:$0xff] }
   0x4   :  { %v64_v5 = vsel %vm62_vm0, %v20_v2, 0 }
   0x5   :  { %73 = vmatpush.bf16.msra.mxu0 %v64_v5  ;;  %144 = vmatpush.bf16.msra.mxu1 %v64_v5 }
   0x8   :  { %129 = vmatmul.msk.bf16.vlgmr.msra.gmra.mxu0 %vm55_vm1, %v131_v6  ;;  %130 = vmatmul.msk.bf16.vlgmr.msra.gmra.mxu1 %vm55_vm1, %v132_v7 }
   0xa   :  { %42 = vperm.xlu1 %147, %v24_v8  }
   0xb   :  { %32 = vperm.xlu0 %146, %v22_v9  }
  0x74   :  { %v38_v10 = vpop.permute.xlu1 %37 }
  0x75   :  { %v28_v11 = vpop.permute.xlu0 %27 }
  0x7c   :  { %v43_v19 = vpop.permute.xlu1 %42 }
  0x7d   :  { %v33_v20 = vpop.permute.xlu0 %32 }
  0x85   :  { %v75_v12 = vpop.f32.mrf.mxu0  ;;  %v80_v13 = vpop.f32.mrf.mxu1 }
  0x86   :  { %v76_v14 = vadd.f32 %v75_v12, %v28_v11  ;;  %v81_v15 = vadd.f32 %v80_v13, %v38_v10 }
  0x88   :  { %v85_v16 = vsub.f32 0.0, %v76_v14  ;;  %v87_v17 = vsub.f32 0.0, %v81_v15 }
  0x8a   :  { %v89_v18 = vmul.f32 1.442695, %v85_v16  ;;  %v93_v21 = vmul.f32 1.442695, %v87_v17 }
  0x8c   :  { %148 = vpow2.f32 %v89_v18 }
  0x8d   :  { %v77_v22 = vpop.f32.mrf.mxu0  ;;  %v82_v23 = vpop.f32.mrf.mxu1  ;;  %150 = vpow2.f32 %v93_v21 }
  0x8e   :  { %v78_v24 = vadd.f32 %v77_v22, %v33_v20  ;;  %v83_v25 = vadd.f32 %v82_v23, %v43_v19 }
  0x90   :  { %v86_v26 = vsub.f32 0.0, %v78_v24  ;;  %v88_v27 = vsub.f32 0.0, %v83_v25 }
  0x92   :  { %v91_v28 = vmul.f32 1.442695, %v86_v26  ;;  %v95_v29 = vmul.f32 1.442695, %v88_v27  ;;  %v149_v30 = vpop.eup %148 }
  0x93   :  { %v151_v31 = vpop.eup %150  ;;  %v97_v32 = vadd.f32 1.0, %v149_v30 }
  0x94   :  { %152 = vpow2.f32 %v91_v28  ;;  %v99_v34 = vadd.f32 1.0, %v151_v31 }
  0x95   :  { %154 = vpow2.f32 %v95_v29 }
  0x96   :  { %156 = vrcp.f32 %v97_v32 }
  0x9a   :  { %v153_v33 = vpop.eup %152 }
  0x9b   :  { %v98_v35 = vadd.f32 1.0, %v153_v33  ;;  %v155_v36 = vpop.eup %154 }
  0x9c   :  { %v100_v37 = vadd.f32 1.0, %v155_v36  ;;  %v157_v38 = vpop.eup %156 }
  0x9d   :  { %158 = vrcp.f32 %v98_v35  ;;  %v105_v41 = vmul.f32 %v157_v38, %v76_v14 }
  0x9e   :  { %160 = vrcp.f32 %v99_v34 }
  0x9f   :  { %162 = vrcp.f32 %v100_v37 }
  0xa3   :  { %v159_v39 = vpop.eup %158 }
  0xa4   :  { %v161_v40 = vpop.eup %160  ;;  %v106_v42 = vmul.f32 %v159_v39, %v78_v24 }
  0xa5   :  { %v163_v43 = vpop.eup %162  ;;  %v107_v45 = vmul.f32 %v161_v40, %v81_v15 }
  0xa6   :  { %v136_v44 = vpack.c.bf16 %v106_v42, %v105_v41  ;;  %v108_v46 = vmul.f32 %v163_v43, %v83_v25 }
  0xa8   :  { %137 = vst [vmem:[%s215_s3] sm:$0xff] %v136_v44   ;;  %v141_v47 = vpack.c.bf16 %v108_v46, %v107_v45 }
  0xaa   :  { %143 = vst [vmem:[%s215_s3 + $0x8] sm:$0xff] %v141_v47  }

// kernel: graph_regressor_forward.9
= control target key start
LH: loop header
LB: loop body
LE: loop exit
PB: predicated region body
PF: predicated region fallthrough
CT: control target
= control target key end

     0   :  { %v334_v1 = vmov 0   ;;  %vm107_vm0 = vcmask 785408   ;;  %vm197_vm1 = vcmask 261120   ;;  %s434_s0 = inlined_call_operand.vmem [shape: bf16[96,128], index: 0, kind: input, shape index: {}]   ;;  %s435_s2 = inlined_call_operand.vmem [shape: f32[32,1], index: 2, kind: input, shape index: {}]   ;;  %s436_s4 = inlined_call_operand.vmem [shape: f32[32,1], index: 4, kind: input, shape index: {}]   ;;  %s437_s1 = inlined_call_operand.vmem [shape: bf16[32,96], index: 1, kind: input, shape index: {}]   ;;  %s438_s3 = inlined_call_operand.vmem [shape: bf16[32,32], index: 3, kind: input, shape index: {}]   ;;  %s439_s5 = inlined_call_operand.vmem [shape: bf16[32,128], index: 5, kind: output, shape index: {}]  }
   0x1   :  { %v292_v0 = vld [vmem:[%s434_s0 + $0x28] sm:$0xff]  ;;  %315 = vset.pattern.permute.xlu0 %v334_v1  ;;  %316 = vset.pattern.permute.xlu1 %v334_v1  ;;  %v291_v2 = vld [vmem:[%s434_s0 + $0x20] sm:$0xff]  ;;  %v39_v3 = vld [vmem:[%s435_s2 + $0x10] sm:$0xff] }
   0x2   :  { %317 = vset.pattern.permute.xlu2 %v334_v1  ;;  %116 = vmatpush.bf16.msra.mxu0 %v292_v0  ;;  %v37_v4 = vld [vmem:[%s435_s2] sm:$0xff]  ;;  %v290_v5 = vld [vmem:[%s434_s0 + $0x18] sm:$0xff]  ;;  %v38_v7 = vld [vmem:[%s435_s2 + $0x8] sm:$0xff] }
   0x3   :  { %308 = vmatpush.bf16.msra.mxu2 %v292_v0  ;;  %53 = vperm.xlu0 %315, %v39_v3   ;;  %v40_v6 = vld [vmem:[%s435_s2 + $0x18] sm:$0xff]  ;;  %v289_v8 = vld [vmem:[%s434_s0 + $0x10] sm:$0xff]  ;;  %v288_v9 = vld [vmem:[%s434_s0 + $0x8] sm:$0xff] }
   0x4   :  { %43 = vperm.xlu1 %316, %v37_v4   ;;  %v165_v10 = vld [vmem:[%s436_s4 + $0x10] sm:$0xff]  ;;  %v166_v11 = vld [vmem:[%s436_s4 + $0x18] sm:$0xff]  ;;  %v287_v12 = vld [vmem:[%s434_s0] sm:$0xff] }
   0x5   :  { %v293_v13 = vld [vmem:[%s437_s1] sm:$0xff]  ;;  %v294_v14 = vld [vmem:[%s437_s1 + $0x8] sm:$0xff] }
   0x6   :  { %117 = vmatpush.bf16.msra.mxu0 %v291_v2  ;;  %v163_v43 = vld [vmem:[%s436_s4] sm:$0xff]  ;;  %v164_v50 = vld [vmem:[%s436_s4 + $0x8] sm:$0xff] }
   0x7   :  { %309 = vmatpush.bf16.msra.mxu2 %v291_v2  ;;  %169 = vperm.xlu2 %317, %v163_v43   ;;  %v295_v55 = vld [vmem:[%s438_s3] sm:$0xff]  ;;  %v296_v56 = vld [vmem:[%s438_s3 + $0x8] sm:$0xff] }
   0x8   :  { %v21_v59 = vld [vmem:[%s434_s0] sm:$0xf]  ;;  %v22_v60 = vld [vmem:[%s434_s0 + $0x4] sm:$0xff]  }
   0x9   :  { %v223_v63 = vunpack.c.l.bf16 %v21_v59  ;;  %v224_v0 = vunpack.c.l.bf16 %v22_v60 }
   0xa   :  { %118 = vmatpush.bf16.msra.mxu0 %v290_v5 }
   0xb   :  { %310 = vmatpush.bf16.msra.mxu2 %v290_v5  ;;  %58 = vperm.xlu0 %315, %v40_v6  }
   0xc   :  { %48 = vperm.xlu1 %316, %v38_v7   ;;  %v24_v7 = vld [vmem:[%s434_s0 + $0xc] sm:$0xf] }
   0xe   :  { %119 = vmatpush.bf16.msra.mxu0 %v289_v8 }
   0xf   :  { %311 = vmatpush.bf16.msra.mxu2 %v289_v8  ;;  %174 = vperm.xlu2 %317, %v164_v50  }
  0x12   :  { %120 = vmatpush.bf16.msra.mxu0 %v288_v9 }
  0x13   :  { %312 = vmatpush.bf16.msra.mxu2 %v288_v9  ;;  %179 = vperm.xlu0 %315, %v165_v10   ;;  %v225_v10 = vunpack.c.h.bf16 %v22_v60 }
  0x14   :  { %184 = vperm.xlu1 %316, %v166_v11   ;;  %v226_v11 = vunpack.c.l.bf16 %v24_v7 }
  0x16   :  { %121 = vmatpush.bf16.msra.mxu0 %v287_v12 }
  0x17   :  { %313 = vmatpush.bf16.msra.mxu2 %v287_v12 }
  0x19   :  { %275 = vmatmul.msk.bf16.vlgmr.msra.gmra.mxu0 %vm107_vm0, %v293_v13 }
  0x1a   :  { %276 = vmatmul.msk.bf16.vlgmr.msra.gmra.mxu2 %vm107_vm0, %v294_v14 }
  0x61   :  { %v170_v57 = vpop.permute.xlu2 %169 }
  0x69   :  { %v175_v61 = vpop.permute.xlu2 %174 }
  0x75   :  { %v54_v17 = vpop.permute.xlu0 %53 }
  0x76   :  { %v44_v15 = vpop.permute.xlu1 %43 }
  0x7d   :  { %v59_v29 = vpop.permute.xlu0 %58 }
  0x7e   :  { %v49_v21 = vpop.permute.xlu1 %48 }
  0x85   :  { %v180_v8 = vpop.permute.xlu0 %179 }
  0x86   :  { %v185_v12 = vpop.permute.xlu1 %184 }
  0x96   :  { %v123_v16 = vpop.f32.mrf.mxu0 }
  0x97   :  { %v124_v19 = vadd.f32 %v123_v16, %v44_v15 }
  0x99   :  { %v133_v25 = vsub.f32 0.0, %v124_v19 }
  0x9b   :  { %v137_v31 = vmul.f32 1.442695, %v133_v25 }
  0x9d   :  { %v128_v18 = vpop.f32.mrf.mxu2 }
  0x9e   :  { %v129_v20 = vadd.f32 %v128_v18, %v54_v17  ;;  %v125_v22 = vpop.f32.mrf.mxu0 }
  0x9f   :  { %v126_v24 = vadd.f32 %v125_v22, %v49_v21 }
  0xa0   :  { %v135_v23 = vsub.f32 0.0, %v129_v20 }
  0xa1   :  { %v134_v27 = vsub.f32 0.0, %v126_v24 }
  0xa2   :  { %v141_v26 = vmul.f32 1.442695, %v135_v23 }
  0xa3   :  { %v139_v28 = vmul.f32 1.442695, %v134_v27 }
  0xa4   :  { %318 = vpow2.f32 %v141_v26 }
  0xa5   :  { %v130_v30 = vpop.f32.mrf.mxu2  ;;  %320 = vpow2.f32 %v139_v28 }
  0xa6   :  { %v131_v32 = vadd.f32 %v130_v30, %v59_v29  ;;  %322 = vpow2.f32 %v137_v31 }
  0xa8   :  { %v136_v33 = vsub.f32 0.0, %v131_v32 }
  0xaa   :  { %v143_v34 = vmul.f32 1.442695, %v136_v33  ;;  %v319_v35 = vpop.eup %318 }
  0xab   :  { %v321_v36 = vpop.eup %320  ;;  %v147_v37 = vadd.f32 1.0, %v319_v35 }
  0xac   :  { %324 = vpow2.f32 %v143_v34  ;;  %v323_v38 = vpop.eup %322  ;;  %v146_v39 = vadd.f32 1.0, %v321_v36 }
  0xad   :  { %v145_v41 = vadd.f32 1.0, %v323_v38  ;;  %326 = vrcp.f32 %v147_v37 }
  0xae   :  { %328 = vrcp.f32 %v146_v39 }
  0xb2   :  { %v325_v40 = vpop.eup %324 }
  0xb3   :  { %v148_v42 = vadd.f32 1.0, %v325_v40  ;;  %v327_v44 = vpop.eup %326 }
  0xb4   :  { %v329_v45 = vpop.eup %328  ;;  %v155_v47 = vmul.f32 %v327_v44, %v129_v20 }
  0xb5   :  { %330 = vrcp.f32 %v148_v42  ;;  %v154_v51 = vmul.f32 %v329_v45, %v126_v24 }
  0xb6   :  { %332 = vrcp.f32 %v145_v41 }
  0xbb   :  { %v331_v46 = vpop.eup %330 }
  0xbc   :  { %v156_v48 = vmul.f32 %v331_v46, %v131_v32  ;;  %v333_v49 = vpop.eup %332 }
  0xbd   :  { %v153_v53 = vmul.f32 %v333_v49, %v124_v19 }
  0xbe   :  { %v162_v52 = vpack.c.bf16 %v156_v48, %v155_v47 }
  0xbf   :  { %v161_v54 = vpack.c.bf16 %v154_v51, %v153_v53 }
  0xc0   :  { %210 = vmatpush.bf16.msra.mxu1 %v162_v52 }
  0xc4   :  { %211 = vmatpush.bf16.msra.mxu1 %v161_v54 }
  0xc7   :  { %285 = vmatmul.msk.bf16.vlgmr.msra.gmra.mxu1 %vm197_vm1, %v295_v55 }
  0xd7   :  { %286 = vmatmul.msk.bf16.gmra.mxu1 %vm197_vm1, %v296_v56 }
 0x144   :  { %v213_v58 = vpop.f32.mrf.mxu1 }
 0x145   :  { %v214_v62 = vadd.f32 %v213_v58, %v170_v57 }
 0x147   :  { %v227_v3 = vadd.f32 %v223_v63, %v214_v62 }
 0x14c   :  { %v215_v1 = vpop.f32.mrf.mxu1 }
 0x14d   :  { %v216_v2 = vadd.f32 %v215_v1, %v175_v61 }
 0x14f   :  { %v228_v4 = vadd.f32 %v224_v0, %v216_v2 }
 0x151   :  { %v300_v5 = vpack.c.bf16 %v228_v4, %v227_v3 }
 0x153   :  { %301 = vst [vmem:[%s439_s5] sm:$0xff] %v300_v5  }
 0x154   :  { %v218_v6 = vpop.f32.mrf.mxu1 }
 0x155   :  { %v219_v9 = vadd.f32 %v218_v6, %v180_v8 }
 0x157   :  { %v229_v15 = vadd.f32 %v225_v10, %v219_v9 }
 0x15c   :  { %v220_v13 = vpop.f32.mrf.mxu1 }
 0x15d   :  { %v221_v14 = vadd.f32 %v220_v13, %v185_v12 }
 0x15f   :  { %v230_v16 = vadd.f32 %v226_v11, %v221_v14 }
 0x161   :  { %v305_v17 = vpack.c.bf16 %v230_v16, %v229_v15 }
 0x163   :  { %307 = vst [vmem:[%s439_s5 + $0x8] sm:$0xff] %v305_v17  }

// kernel: graph_regressor_forward.13
= control target key start
LH: loop header
LB: loop body
LE: loop exit
PB: predicated region body
PF: predicated region fallthrough
CT: control target
= control target key end

     0   :  { %v311_v1 = vmov 0   ;;  %vm113_vm0 = vcmask 261120   ;;  %vm214_vm1 = vcmask 523264   ;;  %s409_s0 = inlined_call_operand.vmem [shape: bf16[32,128], index: 0, kind: input, shape index: {}]   ;;  %s410_s2 = inlined_call_operand.vmem [shape: f32[64,1], index: 2, kind: input, shape index: {}]   ;;  %s411_s1 = inlined_call_operand.vmem [shape: bf16[64,32], index: 1, kind: input, shape index: {}]   ;;  %s412_s4 = inlined_call_operand.vmem [shape: f32[4,1], index: 4, kind: input, shape index: {}]   ;;  %s413_s3 = inlined_call_operand.vmem [shape: bf16[4,64], index: 3, kind: input, shape index: {}]   ;;  %s414_s5 = inlined_call_operand.vmem [shape: f32[4,128], index: 5, kind: output, shape index: {}]  }
   0x1   :  { %v270_v0 = vld [vmem:[%s409_s0 + $0x8] sm:$0xff]  ;;  %276 = vset.pattern.permute.xlu0 %v311_v1  ;;  %v39_v2 = vld [vmem:[%s410_s2 + $0x30] sm:$0xff]  ;;  %277 = vset.pattern.permute.xlu1 %v311_v1  ;;  %v269_v3 = vld [vmem:[%s409_s0] sm:$0xff] }
   0x2   :  { %73 = vperm.xlu0 %276, %v39_v2   ;;  %278 = vset.pattern.permute.xlu2 %v311_v1  ;;  %v37_v4 = vld [vmem:[%s410_s2 + $0x20] sm:$0xff]  ;;  %v35_v5 = vld [vmem:[%s410_s2 + $0x10] sm:$0xff]  ;;  %v266_v7 = vld [vmem:[%s411_s1 + $0x8] sm:$0xff] }
   0x3   :  { %132 = vmatpush.bf16.msra.mxu0 %v270_v0  ;;  %271 = vmatpush.bf16.msra.mxu2 %v270_v0  ;;  %v265_v6 = vld [vmem:[%s411_s1] sm:$0xff]  ;;  %v268_v8 = vld [vmem:[%s411_s1 + $0x18] sm:$0xff]  ;;  %v38_v10 = vld [vmem:[%s410_s2 + $0x28] sm:$0xff] }
   0x4   :  { %272 = vmatpush.bf16.msra.mxu3 %v270_v0  ;;  %63 = vperm.xlu1 %277, %v37_v4   ;;  %v40_v9 = vld [vmem:[%s410_s2 + $0x38] sm:$0xff]  ;;  %v33_v12 = vld [vmem:[%s410_s2] sm:$0xff]  ;;  %v34_v13 = vld [vmem:[%s410_s2 + $0x8] sm:$0xff] }
   0x5   :  { %53 = vperm.xlu2 %278, %v35_v5   ;;  %v36_v11 = vld [vmem:[%s410_s2 + $0x18] sm:$0xff]  ;;  %v208_v14 = vld [vmem:[%s412_s4] sm:$0xf]  ;;  %v267_v15 = vld [vmem:[%s411_s1 + $0x10] sm:$0xff] }
   0x7   :  { %133 = vmatpush.bf16.msra.mxu0 %v269_v3  ;;  %273 = vmatpush.bf16.msra.mxu2 %v269_v3 }
   0x8   :  { %274 = vmatpush.bf16.msra.mxu3 %v269_v3 }
   0xa   :  { %260 = vmatmul.msk.bf16.vlgmr.msra.gmra.mxu0 %vm113_vm0, %v265_v6  ;;  %261 = vmatmul.msk.bf16.vlgmr.msra.gmra.mxu2 %vm113_vm0, %v266_v7 }
   0xb   :  { %263 = vmatmul.msk.bf16.vlgmr.msra.gmra.mxu3 %vm113_vm0, %v268_v8  ;;  %78 = vperm.xlu0 %276, %v40_v9  }
   0xc   :  { %68 = vperm.xlu1 %277, %v38_v10  }
   0xd   :  { %58 = vperm.xlu2 %278, %v36_v11  }
  0x13   :  { %43 = vperm.xlu0 %276, %v33_v12  }
  0x14   :  { %48 = vperm.xlu1 %277, %v34_v13  }
  0x15   :  { %211 = vperm.xlu2 %278, %v208_v14  }
  0x1a   :  { %262 = vmatmul.msk.bf16.gmra.mxu2 %vm113_vm0, %v267_v15 }
  0x5f   :  { %v54_v18 = vpop.permute.xlu2 %53 }
  0x67   :  { %v59_v28 = vpop.permute.xlu2 %58 }
  0x74   :  { %v74_v17 = vpop.permute.xlu0 %73 }
  0x76   :  { %v64_v16 = vpop.permute.xlu1 %63 }
  0x7d   :  { %v79_v25 = vpop.permute.xlu0 %78 }
  0x7e   :  { %v69_v22 = vpop.permute.xlu1 %68 }
  0x85   :  { %v44_v40 = vpop.permute.xlu0 %43 }
  0x86   :  { %v49_v33 = vpop.permute.xlu1 %48 }
  0x87   :  { %v135_v23 = vpop.f32.mrf.mxu0 }
  0x88   :  { %v136_v45 = vadd.f32 %v135_v23, %v44_v40 }
  0x8a   :  { %v155_v52 = vsub.f32 0.0, %v136_v45 }
  0x8c   :  { %v163_v58 = vmul.f32 1.442695, %v155_v52 }
  0x8d   :  { %v140_v19 = vpop.f32.mrf.mxu2 }
  0x8e   :  { %v150_v20 = vpop.f32.mrf.mxu3  ;;  %v394_v38 = vadd.f32 %v140_v19, %v54_v18 }
  0x8f   :  { %v151_v21 = vadd.f32 %v150_v20, %v74_v17  ;;  %v137_v34 = vpop.f32.mrf.mxu0 }
  0x90   :  { %v396_v41 = vadd.f32 %v137_v34, %v49_v33  ;;  %v157_v46 = vsub.f32 0.0, %v394_v38 }
  0x91   :  { %v161_v24 = vsub.f32 0.0, %v151_v21 }
  0x92   :  { %v156_v49 = vsub.f32 0.0, %v396_v41  ;;  %v167_v53 = vmul.f32 1.442695, %v157_v46 }
  0x93   :  { %v175_v27 = vmul.f32 1.442695, %v161_v24 }
  0x94   :  { %v165_v55 = vmul.f32 1.442695, %v156_v49 }
  0x95   :  { %v142_v26 = vpop.f32.mrf.mxu2  ;;  %279 = vpow2.f32 %v175_v27 }
  0x96   :  { %v152_v29 = vpop.f32.mrf.mxu3  ;;  %v391_v31 = vadd.f32 %v142_v26, %v59_v28  ;;  %v203_v28 = vld [vmem:[%s413_s3] sm:$0x3] }
  0x97   :  { %v153_v30 = vadd.f32 %v152_v29, %v79_v25  ;;  %v212_v29 = vpop.permute.xlu2 %211 }
  0x98   :  { %v158_v36 = vsub.f32 0.0, %v391_v31 }
  0x99   :  { %v162_v32 = vsub.f32 0.0, %v153_v30 }
  0x9a   :  { %v169_v44 = vmul.f32 1.442695, %v158_v36 }
  0x9b   :  { %v177_v35 = vmul.f32 1.442695, %v162_v32  ;;  %v280_v42 = vpop.eup %279 }
  0x9c   :  { %v185_v48 = vadd.f32 1.0, %v280_v42 }
  0x9d   :  { %v145_v37 = vpop.f32.mrf.mxu2  ;;  %281 = vpow2.f32 %v177_v35 }
  0x9e   :  { %v146_v39 = vadd.f32 %v145_v37, %v64_v16  ;;  %283 = vpow2.f32 %v169_v44 }
  0xa0   :  { %v159_v43 = vsub.f32 0.0, %v146_v39 }
  0xa2   :  { %v171_v47 = vmul.f32 1.442695, %v159_v43 }
  0xa3   :  { %v282_v51 = vpop.eup %281 }
  0xa4   :  { %285 = vpow2.f32 %v171_v47  ;;  %v186_v56 = vadd.f32 1.0, %v282_v51  ;;  %v284_v60 = vpop.eup %283 }
  0xa5   :  { %v147_v50 = vpop.f32.mrf.mxu2  ;;  %287 = vrcp.f32 %v185_v48  ;;  %v182_v2 = vadd.f32 1.0, %v284_v60 }
  0xa6   :  { %v148_v54 = vadd.f32 %v147_v50, %v69_v22  ;;  %289 = vrcp.f32 %v186_v56 }
  0xa7   :  { %291 = vpow2.f32 %v167_v53 }
  0xa8   :  { %v160_v57 = vsub.f32 0.0, %v148_v54  ;;  %293 = vpow2.f32 %v165_v55 }
  0xaa   :  { %v173_v59 = vmul.f32 1.442695, %v160_v57  ;;  %v286_v61 = vpop.eup %285 }
  0xab   :  { %v288_v62 = vpop.eup %287  ;;  %v183_v0 = vadd.f32 1.0, %v286_v61 }
  0xac   :  { %295 = vpow2.f32 %v173_v59  ;;  %v290_v63 = vpop.eup %289  ;;  %v201_v3 = vmul.f32 %v288_v62, %v151_v21 }
  0xad   :  { %297 = vpow2.f32 %v163_v58  ;;  %v292_v1 = vpop.eup %291  ;;  %v202_v4 = vmul.f32 %v290_v63, %v153_v30 }
  0xae   :  { %v294_v5 = vpop.eup %293  ;;  %v181_v8 = vadd.f32 1.0, %v292_v1  ;;  %299 = vrcp.f32 %v183_v0 }
  0xaf   :  { %v207_v7 = vpack.c.bf16 %v202_v4, %v201_v3  ;;  %301 = vrcp.f32 %v182_v2  ;;  %v180_v11 = vadd.f32 1.0, %v294_v5 }
  0xb1   :  { %222 = vmatpush.bf16.msra.mxu1 %v207_v7 }
  0xb2   :  { %v296_v6 = vpop.eup %295 }
  0xb3   :  { %v184_v9 = vadd.f32 1.0, %v296_v6  ;;  %v298_v10 = vpop.eup %297 }
  0xb4   :  { %v179_v12 = vadd.f32 1.0, %v298_v10  ;;  %v300_v13 = vpop.eup %299 }
  0xb5   :  { %303 = vrcp.f32 %v184_v9  ;;  %v302_v14 = vpop.eup %301  ;;  %v199_v16 = vmul.f32 %v300_v13, %v146_v39 }
  0xb6   :  { %305 = vrcp.f32 %v181_v8  ;;  %v198_v19 = vmul.f32 %v302_v14, %v391_v31 }
  0xb7   :  { %307 = vrcp.f32 %v180_v11 }
  0xb8   :  { %309 = vrcp.f32 %v179_v12 }
  0xbb   :  { %v304_v15 = vpop.eup %303 }
  0xbc   :  { %v200_v17 = vmul.f32 %v304_v15, %v148_v54  ;;  %v306_v18 = vpop.eup %305 }
  0xbd   :  { %v308_v21 = vpop.eup %307  ;;  %v197_v22 = vmul.f32 %v306_v18, %v394_v38 }
  0xbe   :  { %v206_v20 = vpack.c.bf16 %v200_v17, %v199_v16  ;;  %v310_v23 = vpop.eup %309  ;;  %v196_v24 = vmul.f32 %v308_v21, %v396_v41 }
  0xbf   :  { %v205_v25 = vpack.c.bf16 %v198_v19, %v197_v22  ;;  %v195_v26 = vmul.f32 %v310_v23, %v136_v45 }
  0xc0   :  { %223 = vmatpush.bf16.msra.mxu1 %v206_v20 }
  0xc1   :  { %v204_v27 = vpack.c.bf16 %v196_v24, %v195_v26 }
  0xc4   :  { %224 = vmatpush.bf16.msra.mxu1 %v205_v25 }
  0xc8   :  { %225 = vmatpush.bf16.msra.mxu1 %v204_v27 }
  0xcb   :  { %264 = vmatmul.msk.bf16.vlgmr.msra.gmra.mxu1 %vm214_vm1, %v203_v28 }
 0x148   :  { %v227_v30 = vpop.f32.mrf.mxu1 }
 0x149   :  { %v228_v31 = vadd.f32 %v227_v30, %v212_v29 }
 0x14b   :  { %231 = vst [vmem:[%s414_s5] sm:$0xf] %v228_v31 }
 0x150   :  { %v229_v32 = vpop.f32.mrf.mxu1 }

// kernel: graph_regressor_forward.10
= control target key start
LH: loop header
LB: loop body
LE: loop exit
PB: predicated region body
PF: predicated region fallthrough
CT: control target
= control target key end

     0   :  { %v751_v0 = vmov 0.0   ;;  %s916_s1 = inlined_call_operand.<no memory space> [shape: s32[1], index: 1, kind: input, shape index: {}]   ;;  %s917_s4 = inlined_call_operand.vmem [shape: bf16[32,128], index: 4, kind: input, shape index: {}]   ;;  %s918_s5 = inlined_call_operand.vmem [shape: bf16[32,32], index: 5, kind: input, shape index: {}]   ;;  %s919_s6 = inlined_call_operand.vmem [shape: bf16[32,32], index: 6, kind: input, shape index: {}]   ;;  %s920_s7 = inlined_call_operand.vmem [shape: f32[32,1], index: 7, kind: input, shape index: {}]   ;;  %s921_s8 = inlined_call_operand.vmem [shape: bf16[32,32], index: 8, kind: input, shape index: {}]   ;;  %s922_s9 = inlined_call_operand.vmem [shape: f32[32,1], index: 9, kind: input, shape index: {}]   ;;  %s923_s10 = inlined_call_operand.vmem [shape: bf16[32,128], index: 10, kind: output, shape index: {}]   ;;  %s924_s0 = inlined_call_operand.<no memory space> [shape: s32[1], index: 0, kind: input, shape index: {}]   ;;  %s925_s3 = inlined_call_operand.vmem [shape: bf16[32,128], index: 3, kind: input, shape index: {}]   ;;  %s926_s2 = inlined_call_operand.vmem [shape: s32[128,1], index: 2, kind: input, shape index: {}]  }
   0x1   :  { %s601_s15 = sadd.s32 4294967295, %s916_s1  ;;  %167 = vst [vmem:[#allocation2 + $0x10] sm:$0xff] %v751_v0  ;;  %p116_p1 = scmp.gt.s32.totalorder %s916_s1, 0 }
   0x2   :  { %p114_p0 = scmp.gt.s32.totalorder %s601_s15, 0  ;;  %168 = vst [vmem:[#allocation2] sm:$0xff] %v751_v0  ;;  %p609_p4 = scmp.le.s32.totalorder %s916_s1, 0 }
   0x3   :  { %169 = vst [vmem:[#allocation2 + $0x18] sm:$0xff] %v751_v0 }
   0x4   :  { %s928_s15 = smov (!%p114_p0, %s601_s15), 0  ;;  %170 = vst [vmem:[#allocation2 + $0x8] sm:$0xff] %v751_v0 }
   0x5   :  { %s930_s15 = smov (%p114_p0, %s928_s15), 0 }
   0x6   :  { %s120_s20 = sadd.s32 %s930_s15, %s924_s0 }
   0x7   :  { %s932_s20 = smov (!%p116_p1, %s120_s20), 0 }
   0x8   :  { %s603_s21 = sshll.u32 %s932_s20, 4  ;;  %p148_p2 = scmp.lt.s32.totalorder %s932_s20, 0 }
   0x9   :  { %p123_p3 = scmp.lt.s32.totalorder %s603_s21, 15  ;;  %175 = sbr.rel (%p609_p4) target bundleno = 315 (0x13b), region = 41 }
   0xa   :  { %s934_s20 = smov (!%p148_p2, %s932_s20), 0 }
   0xb   :  { %s936_s21 = smov (!%p123_p3, %s603_s21), 15  ;;  %s607_s22 = sshll.u32 %s934_s20, 2 }
   0xc   :  { %s604_s23 = sshll.u32 %s936_s21, 3  ;;  %s822_s26 = scalar_lea.vmem %s925_s3, %s607_s22 }
   0xd   :  { %s827_s29 = scalar_lea.vmem %s926_s2, %s604_s23 }
   0xe   :  { %v195_v1 = vld [vmem:[%s827_s29 + $0x70] sm:$0xff]  ;;  %v193_v2 = vld [vmem:[%s827_s29 + $0x60] sm:$0xff]  ;;  %v752_v4 = vmov 0   ;;  %v194_v5 = vld [vmem:[%s827_s29 + $0x68] sm:$0xff]  ;;  %v177_v21 = vlaneseq  ;;  %v753_v26 = vmov 1.0|1.0  }
   0xf   :  { %v191_v3 = vld [vmem:[%s827_s29 + $0x50] sm:$0xff]  ;;  %731 = vset.pattern.permute.xlu2 %v752_v4  ;;  %730 = vset.pattern.permute.xlu1 %v752_v4  ;;  %v196_v6 = vld [vmem:[%s827_s29 + $0x78] sm:$0xff]  ;;  %v190_v8 = vld [vmem:[%s827_s29 + $0x48] sm:$0xff] }
  0x10   :  { %729 = vset.pattern.permute.xlu0 %v752_v4  ;;  %234 = vperm.xlu1 %730, %v193_v2   ;;  %v192_v7 = vld [vmem:[%s827_s29 + $0x58] sm:$0xff]  ;;  %v189_v9 = vld [vmem:[%s827_s29 + $0x40] sm:$0xff]  ;;  %v187_v10 = vld [vmem:[%s827_s29 + $0x30] sm:$0xff]  ;;  %v178_v22 = vand.u32 127, %v177_v21 }
  0x11   :  { %240 = vperm.xlu0 %729, %v195_v1   ;;  %228 = vperm.xlu2 %731, %v191_v3   ;;  %v185_v11 = vld [vmem:[%s827_s29 + $0x20] sm:$0xff]  ;;  %v188_v12 = vld [vmem:[%s827_s29 + $0x38] sm:$0xff]  ;;  %v186_v13 = vld [vmem:[%s827_s29 + $0x28] sm:$0xff] }
  0x12   :  { %v184_v14 = vld [vmem:[%s827_s29 + $0x18] sm:$0xff]  ;;  %v183_v15 = vld [vmem:[%s827_s29 + $0x10] sm:$0xff]  ;;  %v181_v16 = vld [vmem:[%s827_s29] sm:$0xff] }
  0x13   :  { %v182_v17 = vld [vmem:[%s827_s29 + $0x8] sm:$0xff]  ;;  %v694_v37 = vld [vmem:[%s822_s26] sm:$0xff]  ;;  %v301_v39 = vld [vmem:[#allocation2 + $0x10] sm:$0xff] }
  0x14   :  { %v695_v38 = vld [vmem:[%s822_s26 + $0x8] sm:$0xff]  ;;  %v303_v40 = vld [vmem:[#allocation2 + $0x18] sm:$0xff]  ;;  %v302_v45 = vld [vmem:[#allocation2] sm:$0xff] }
  0x15   :  { %v304_v46 = vld [vmem:[#allocation2 + $0x8] sm:$0xff] }
  0x18   :  { %237 = vperm.xlu1 %730, %v194_v5  }
  0x19   :  { %243 = vperm.xlu0 %729, %v196_v6   ;;  %231 = vperm.xlu2 %731, %v192_v7  }
  0x20   :  { %225 = vperm.xlu1 %730, %v190_v8  }
  0x21   :  { %222 = vperm.xlu0 %729, %v189_v9   ;;  %216 = vperm.xlu2 %731, %v187_v10  }
  0x28   :  { %210 = vperm.xlu1 %730, %v185_v11  }
  0x29   :  { %219 = vperm.xlu0 %729, %v188_v12   ;;  %213 = vperm.xlu2 %731, %v186_v13  }
  0x30   :  { %207 = vperm.xlu1 %730, %v184_v14  }
  0x31   :  { %204 = vperm.xlu0 %729, %v183_v15   ;;  %198 = vperm.xlu2 %731, %v181_v16  }
  0x39   :  { %201 = vperm.xlu0 %729, %v182_v17  }
  0x6b   :  { %v229_v18 = vpop.permute.xlu2 %228 }
  0x6c   :  { %vm255_vm6 = vcmp.eq.s32.totalorder %v229_v18, %v178_v22 }
  0x73   :  { %v232_v24 = vpop.permute.xlu2 %231 }
  0x74   :  { %vm256_vm7 = vcmp.eq.s32.totalorder %v232_v24, %v178_v22 }
  0x75   :  { %vm638_vm8 = vmpackc.low %vm256_vm7, %vm255_vm6 }
  0x7b   :  { %v217_v29 = vpop.permute.xlu2 %216 }
  0x7c   :  { %vm251_vm12 = vcmp.eq.s32.totalorder %v217_v29, %v178_v22 }
  0x82   :  { %v235_v19 = vpop.permute.xlu1 %234 }
  0x83   :  { %v241_v20 = vpop.permute.xlu0 %240  ;;  %vm257_vm4 = vcmp.eq.s32.totalorder %v235_v19, %v178_v22  ;;  %v214_v32 = vpop.permute.xlu2 %213 }
  0x84   :  { %vm259_vm0 = vcmp.eq.s32.totalorder %v241_v20, %v178_v22 }
  0x8a   :  { %v238_v23 = vpop.permute.xlu1 %237 }
  0x8b   :  { %v244_v25 = vpop.permute.xlu0 %243  ;;  %vm258_vm3 = vcmp.eq.s32.totalorder %v238_v23, %v178_v22  ;;  %v199_v35 = vpop.permute.xlu2 %198 }
  0x8c   :  { %vm260_vm1 = vcmp.eq.s32.totalorder %v244_v25, %v178_v22  ;;  %vm636_vm5 = vmpackc.low %vm258_vm3, %vm257_vm4 }
  0x8d   :  { %vm634_vm2 = vmpackc.low %vm260_vm1, %vm259_vm0  ;;  %vm250_vm0 = vcmp.eq.s32.totalorder %v214_v32, %v178_v22 }
  0x8e   :  { %635 = vmatpush.bf16.msk.msra.mxu0 %vm634_vm2, %v753_v26  ;;  %715 = vmatpush.bf16.msk.msra.mxu1 %vm634_vm2, %v753_v26 }
  0x92   :  { %637 = vmatpush.bf16.msk.msra.mxu0 %vm636_vm5, %v753_v26  ;;  %716 = vmatpush.bf16.msk.msra.mxu1 %vm636_vm5, %v753_v26  ;;  %v226_v27 = vpop.permute.xlu1 %225  ;;  %vm245_vm5 = vcmp.eq.s32.totalorder %v199_v35, %v178_v22 }
  0x93   :  { %v223_v28 = vpop.permute.xlu0 %222  ;;  %vm254_vm9 = vcmp.eq.s32.totalorder %v226_v27, %v178_v22 }
  0x94   :  { %vm253_vm10 = vcmp.eq.s32.totalorder %v223_v28, %v178_v22 }
  0x95   :  { %vm640_vm11 = vmpackc.low %vm254_vm9, %vm253_vm10 }
  0x96   :  { %639 = vmatpush.bf16.msk.msra.mxu0 %vm638_vm8, %v753_v26  ;;  %717 = vmatpush.bf16.msk.msra.mxu1 %vm638_vm8, %v753_v26 }
  0x9a   :  { %641 = vmatpush.bf16.msk.msra.mxu0 %vm640_vm11, %v753_v26  ;;  %718 = vmatpush.bf16.msk.msra.mxu1 %vm640_vm11, %v753_v26  ;;  %v211_v30 = vpop.permute.xlu1 %210 }
  0x9b   :  { %v220_v31 = vpop.permute.xlu0 %219  ;;  %vm249_vm15 = vcmp.eq.s32.totalorder %v211_v30, %v178_v22 }
  0x9c   :  { %vm252_vm13 = vcmp.eq.s32.totalorder %v220_v31, %v178_v22  ;;  %vm644_vm1 = vmpackc.low %vm250_vm0, %vm249_vm15 }
  0x9d   :  { %vm642_vm14 = vmpackc.low %vm252_vm13, %vm251_vm12 }
  0x9e   :  { %643 = vmatpush.bf16.msk.msra.mxu0 %vm642_vm14, %v753_v26  ;;  %719 = vmatpush.bf16.msk.msra.mxu1 %vm642_vm14, %v753_v26 }
  0xa2   :  { %645 = vmatpush.bf16.msk.msra.mxu0 %vm644_vm1, %v753_v26  ;;  %720 = vmatpush.bf16.msk.msra.mxu1 %vm644_vm1, %v753_v26  ;;  %v208_v33 = vpop.permute.xlu1 %207 }
  0xa3   :  { %vm248_vm2 = vcmp.eq.s32.totalorder %v208_v33, %v178_v22  ;;  %v205_v34 = vpop.permute.xlu0 %204 }
  0xa4   :  { %vm247_vm3 = vcmp.eq.s32.totalorder %v205_v34, %v178_v22 }
  0xa5   :  { %vm646_vm4 = vmpackc.low %vm248_vm2, %vm247_vm3 }
  0xa6   :  { %647 = vmatpush.bf16.msk.msra.mxu0 %vm646_vm4, %v753_v26  ;;  %721 = vmatpush.bf16.msk.msra.mxu1 %vm646_vm4, %v753_v26 }
  0xab   :  { %v202_v36 = vpop.permute.xlu0 %201 }
  0xac   :  { %vm246_vm6 = vcmp.eq.s32.totalorder %v202_v36, %v178_v22 }
  0xad   :  { %vm648_vm7 = vmpackc.low %vm246_vm6, %vm245_vm5 }
  0xae   :  { %649 = vmatpush.bf16.msk.msra.mxu0 %vm648_vm7, %v753_v26  ;;  %722 = vmatpush.bf16.msk.msra.mxu1 %vm648_vm7, %v753_v26 }
  0xb1   :  { %329 = vmatmul.bf16.vlgmr.msra.gmra.mxu0 %v694_v37  ;;  %334 = vmatmul.bf16.vlgmr.msra.gmra.mxu1 %v695_v38 }
 0x12e   :  { %v330_v41 = vpop.f32.mrf.mxu0  ;;  %v335_v42 = vpop.f32.mrf.mxu1 }
 0x12f   :  { %v340_v43 = vadd.f32 %v330_v41, %v301_v39  ;;  %v342_v44 = vadd.f32 %v335_v42, %v303_v40 }
 0x131   :  { %344 = vst [vmem:[#allocation2 + $0x10] sm:$0xff] %v340_v43 }
 0x132   :  { %346 = vst [vmem:[#allocation2 + $0x18] sm:$0xff] %v342_v44 }
 0x136   :  { %v332_v47 = vpop.f32.mrf.mxu0  ;;  %v337_v48 = vpop.f32.mrf.mxu1 }
 0x137   :  { %v341_v49 = vadd.f32 %v332_v47, %v302_v45  ;;  %v343_v50 = vadd.f32 %v337_v48, %v304_v46 }
 0x139   :  { %345 = vst [vmem:[#allocation2] sm:$0xff] %v341_v49 }
 0x13a   :  { %347 = vst [vmem:[#allocation2 + $0x8] sm:$0xff] %v343_v50 }
 0x13b PF:  { %v365_v51 = vld [vmem:[#allocation2 + $0x18] sm:$0xff]  ;;  %v697_v53 = vld [vmem:[%s917_s4 + $0x8] sm:$0xff]  ;;  %v363_v55 = vld [vmem:[#allocation2 + $0x10] sm:$0xff]  ;;  %v754_v57 = vmov 0   ;;  %vm379_vm8 = vcmask 261120  }
 0x13c   :  { %733 = vset.pattern.permute.xlu1 %v754_v57  ;;  %732 = vset.pattern.permute.xlu0 %v754_v57  ;;  %v696_v58 = vld [vmem:[%s917_s4] sm:$0xff]  ;;  %v454_v60 = vld [vmem:[%s920_s7 + $0x10] sm:$0xff]  ;;  %v701_v0 = vld [vmem:[%s919_s6 + $0x8] sm:$0xff] }
 0x13d   :  { %439 = vmatpush.bf16.msra.mxu1 %v697_v53  ;;  %734 = vset.pattern.permute.xlu2 %v754_v57  ;;  %v452_v61 = vld [vmem:[%s920_s7] sm:$0xff]  ;;  %v455_v1 = vld [vmem:[%s920_s7 + $0x18] sm:$0xff]  ;;  %v453_v2 = vld [vmem:[%s920_s7 + $0x8] sm:$0xff] }
 0x13e   :  { %468 = vperm.xlu0 %732, %v454_v60   ;;  %458 = vperm.xlu1 %733, %v452_v61   ;;  %v698_v62 = vld [vmem:[%s918_s5] sm:$0xff]  ;;  %v512_v3 = vld [vmem:[%s922_s9 + $0x10] sm:$0xff]  ;;  %v513_v4 = vld [vmem:[%s922_s9 + $0x18] sm:$0xff] }
 0x13f   :  { %v700_v63 = vld [vmem:[%s919_s6] sm:$0xff]  ;;  %v699_v5 = vld [vmem:[%s918_s5 + $0x8] sm:$0xff] }
 0x140   :  { %v364_v56 = vld [vmem:[#allocation2] sm:$0xff]  ;;  %v511_v49 = vld [vmem:[%s922_s9 + $0x8] sm:$0xff] }
 0x141   :  { %v366_v52 = vld [vmem:[#allocation2 + $0x8] sm:$0xff]  ;;  %v367_v59 = vpack.c.bf16 %v364_v56, %v363_v55  ;;  %440 = vmatpush.bf16.msra.mxu1 %v696_v58  ;;  %v510_v42 = vld [vmem:[%s922_s9] sm:$0xff] }
 0x142   :  { %v368_v54 = vpack.c.bf16 %v366_v52, %v365_v51  ;;  %516 = vperm.xlu2 %734, %v510_v42   ;;  %v703_v55 = vld [vmem:[%s921_s8 + $0x8] sm:$0xff]  ;;  %v351_v58 = vld [vmem:[%s917_s4] sm:$0xff]  }
 0x143   :  { %v569_v61 = vunpack.c.l.bf16 %v351_v58 }
 0x144   :  { %392 = vmatpush.bf16.msra.mxu0 %v368_v54  ;;  %723 = vmatpush.bf16.msra.mxu3 %v368_v54  ;;  %v702_v54 = vld [vmem:[%s921_s8] sm:$0xff] }
 0x145   :  { %676 = vmatmul.msk.bf16.vlgmr.msra.gmra.mxu1 %vm379_vm8, %v698_v62  ;;  %v570_v62 = vunpack.c.h.bf16 %v351_v58 }
 0x146   :  { %473 = vperm.xlu0 %732, %v455_v1   ;;  %463 = vperm.xlu1 %733, %v453_v2  }
 0x148   :  { %393 = vmatpush.bf16.msra.mxu0 %v367_v59  ;;  %724 = vmatpush.bf16.msra.mxu3 %v367_v59 }
 0x14a   :  { %521 = vperm.xlu2 %734, %v511_v49  }
 0x14b   :  { %658 = vmatmul.msk.bf16.vlgmr.msra.gmra.mxu0 %vm379_vm8, %v700_v63  ;;  %659 = vmatmul.msk.bf16.vlgmr.msra.gmra.mxu3 %vm379_vm8, %v701_v0 }
 0x14e   :  { %526 = vperm.xlu0 %732, %v512_v3   ;;  %531 = vperm.xlu1 %733, %v513_v4  }
 0x155   :  { %677 = vmatmul.msk.bf16.gmra.mxu1 %vm379_vm8, %v699_v5  ;;  %v353_v5 = vld [vmem:[%s917_s4 + $0x8] sm:$0xff]  }
 0x19c   :  { %v517_v56 = vpop.permute.xlu2 %516 }
 0x1a4   :  { %v522_v59 = vpop.permute.xlu2 %521 }
 0x1b0   :  { %v459_v8 = vpop.permute.xlu1 %458  ;;  %v469_v15 = vpop.permute.xlu0 %468 }
 0x1b8   :  { %v464_v12 = vpop.permute.xlu1 %463  ;;  %v474_v29 = vpop.permute.xlu0 %473 }
 0x1c2   :  { %v442_v6 = vpop.f32.mrf.mxu1 }
 0x1c8   :  { %v395_v7 = vpop.f32.mrf.mxu0 }
 0x1c9   :  { %v443_v14 = vadd.f32 %v442_v6, %v395_v7  ;;  %v527_v6 = vpop.permute.xlu0 %526 }
 0x1ca   :  { %v444_v9 = vpop.f32.mrf.mxu1 }
 0x1cb   :  { %v476_v19 = vadd.f32 %v459_v8, %v443_v14  ;;  %v571_v8 = vunpack.c.l.bf16 %v353_v5 }
 0x1cd   :  { %v480_v23 = vsub.f32 0.0, %v476_v19 }
 0x1ce   :  { %v400_v13 = vpop.f32.mrf.mxu3 }
 0x1cf   :  { %v484_v30 = vmul.f32 1.442695, %v480_v23 }
 0x1d0   :  { %v397_v10 = vpop.f32.mrf.mxu0 }
 0x1d1   :  { %v445_v11 = vadd.f32 %v444_v9, %v397_v10  ;;  %v572_v9 = vunpack.c.h.bf16 %v353_v5  ;;  %v532_v10 = vpop.permute.xlu1 %531 }
 0x1d2   :  { %v447_v17 = vpop.f32.mrf.mxu1 }
 0x1d3   :  { %v477_v16 = vadd.f32 %v464_v12, %v445_v11  ;;  %v448_v18 = vadd.f32 %v447_v17, %v400_v13 }
 0x1d5   :  { %v478_v20 = vadd.f32 %v469_v15, %v448_v18  ;;  %v481_v21 = vsub.f32 0.0, %v477_v16 }
 0x1d6   :  { %v402_v26 = vpop.f32.mrf.mxu3 }
 0x1d7   :  { %v482_v22 = vsub.f32 0.0, %v478_v20  ;;  %v486_v25 = vmul.f32 1.442695, %v481_v21 }
 0x1d9   :  { %v488_v24 = vmul.f32 1.442695, %v482_v22 }
 0x1da   :  { %v449_v27 = vpop.f32.mrf.mxu1 }
 0x1db   :  { %v450_v28 = vadd.f32 %v449_v27, %v402_v26  ;;  %735 = vpow2.f32 %v488_v24 }
 0x1dc   :  { %737 = vpow2.f32 %v486_v25 }
 0x1dd   :  { %v479_v31 = vadd.f32 %v474_v29, %v450_v28  ;;  %739 = vpow2.f32 %v484_v30 }
 0x1df   :  { %v483_v32 = vsub.f32 0.0, %v479_v31 }
 0x1e1   :  { %v490_v33 = vmul.f32 1.442695, %v483_v32  ;;  %v736_v34 = vpop.eup %735 }
 0x1e2   :  { %v738_v35 = vpop.eup %737  ;;  %v494_v36 = vadd.f32 1.0, %v736_v34 }
 0x1e3   :  { %741 = vpow2.f32 %v490_v33  ;;  %v740_v37 = vpop.eup %739  ;;  %v493_v38 = vadd.f32 1.0, %v738_v35 }
 0x1e4   :  { %v492_v40 = vadd.f32 1.0, %v740_v37  ;;  %743 = vrcp.f32 %v494_v36 }
 0x1e5   :  { %745 = vrcp.f32 %v493_v38 }
 0x1e9   :  { %v742_v39 = vpop.eup %741 }
 0x1ea   :  { %v495_v41 = vadd.f32 1.0, %v742_v39  ;;  %v744_v43 = vpop.eup %743 }
 0x1eb   :  { %v746_v44 = vpop.eup %745  ;;  %v502_v46 = vmul.f32 %v744_v43, %v478_v20 }
 0x1ec   :  { %747 = vrcp.f32 %v495_v41  ;;  %v501_v50 = vmul.f32 %v746_v44, %v477_v16 }
 0x1ed   :  { %749 = vrcp.f32 %v492_v40 }
 0x1f2   :  { %v748_v45 = vpop.eup %747 }
 0x1f3   :  { %v503_v47 = vmul.f32 %v748_v45, %v479_v31  ;;  %v750_v48 = vpop.eup %749 }
 0x1f4   :  { %v500_v52 = vmul.f32 %v750_v48, %v476_v19 }
 0x1f5   :  { %v509_v51 = vpack.c.bf16 %v503_v47, %v502_v46 }
 0x1f6   :  { %v508_v53 = vpack.c.bf16 %v501_v50, %v500_v52 }
 0x1f7   :  { %556 = vmatpush.bf16.msra.mxu2 %v509_v51 }
 0x1fb   :  { %557 = vmatpush.bf16.msra.mxu2 %v508_v53 }
 0x1fe   :  { %686 = vmatmul.msk.bf16.vlgmr.msra.gmra.mxu2 %vm379_vm8, %v702_v54 }
 0x20e   :  { %687 = vmatmul.msk.bf16.gmra.mxu2 %vm379_vm8, %v703_v55 }
 0x281   :  { %v559_v57 = vpop.f32.mrf.mxu2 }
 0x282   :  { %v560_v60 = vadd.f32 %v559_v57, %v517_v56 }
 0x284   :  { %v573_v1 = vadd.f32 %v569_v61, %v560_v60 }
 0x289   :  { %v561_v63 = vpop.f32.mrf.mxu2 }
 0x28a   :  { %v562_v0 = vadd.f32 %v561_v63, %v522_v59 }
 0x28c   :  { %v574_v2 = vadd.f32 %v570_v62, %v562_v0 }
 0x28e   :  { %v707_v3 = vpack.c.bf16 %v574_v2, %v573_v1 }
 0x290   :  { %708 = vst [vmem:[%s923_s10] sm:$0xff] %v707_v3  }
 0x291   :  { %v564_v4 = vpop.f32.mrf.mxu2 }
 0x292   :  { %v565_v7 = vadd.f32 %v564_v4, %v527_v6 }
 0x294   :  { %v575_v13 = vadd.f32 %v571_v8, %v565_v7 }
 0x299   :  { %v566_v11 = vpop.f32.mrf.mxu2 }
 0x29a   :  { %v567_v12 = vadd.f32 %v566_v11, %v532_v10 }
 0x29c   :  { %v576_v14 = vadd.f32 %v572_v9, %v567_v12 }
 0x29e   :  { %v712_v15 = vpack.c.bf16 %v576_v14, %v575_v13 }
 0x2a0   :  { %714 = vst [vmem:[%s923_s10 + $0x8] sm:$0xff] %v712_v15  }

</bundles_post_ra>
